<compile_context>
chip_gen: v5e
topology: v5e:2x2
jax: 0.10.0
libtpu: 0.0.40
codegen_flags: <defaults>
</compile_context>

<pallas_src>
import jax
import jax.numpy as jnp
from jax import lax
from jax.experimental import pallas as pl
from jax.experimental.pallas import tpu as pltpu

EPS = 1e-5
LANES = 128


def _round_up(x, m):
    return (x + m - 1) // m * m


def _make_conv_stats_kernel(Hp, Wp, Cin_p, Cp, KH, KW, dil, Hout, Wout):
    M = Hout * Wout

    def kernel(xp_ref, w_ref, y_ref, st_ref):
        xp = xp_ref[0]                                        # (Hp, Wp, Cin_p)

        # im2col: lane-aligned concat (each piece is 128*k lanes wide) -> one matmul.
        cols = []
        for ky in range(KH):
            for kx in range(KW):
                win = xp[ky * dil:ky * dil + Hout, kx * dil:kx * dil + Wout, :]
                cols.append(win.reshape(M, Cin_p))
        patches = cols[0] if len(cols) == 1 else jnp.concatenate(cols, axis=1)

        # Single deep-K MXU matmul, f32 accumulation.
        y = jnp.dot(patches, w_ref[...], preferred_element_type=jnp.float32)

        # Fused single-pass BN statistics (per-channel sum / sum-of-squares, f32).
        s1 = jnp.sum(y, axis=0, keepdims=True)                # (1, Cp)
        s2 = jnp.sum(y * y, axis=0, keepdims=True)            # (1, Cp)
        st_ref[...] = jnp.concatenate([s1, s2], axis=0)[None]  # (1, 2, Cp)

        y_ref[...] = y.reshape(1, Hout, Wout, Cp)

    return kernel


def _bn_apply_kernel(y_ref, scale_ref, shift_ref, o_ref):
    # Lane-dense elementwise: (1, Hout, Wout, Cp) * (1,1,1,Cp) + (1,1,1,Cp)
    o_ref[...] = y_ref[...] * scale_ref[...] + shift_ref[...]


def dilated_conv_bn_pallas(x_nchw, w_hwio, gamma, beta, *,
                           stride=1, padding=0, dilation=1):
    """Forward of DilatedConvBN: dilated Conv2d (bias=False) + BatchNorm2d (train mode).

    Takes / returns NCHW (PyTorch convention); weights are HWIO.
    """
    assert stride == 1, "stride > 1 not implemented"  # TODO(synk): see header.
    N, Cin, H, W = x_nchw.shape
    KH, KW, _, Cout = w_hwio.shape
    pad, dil = int(padding), int(dilation)
    Hout = H + 2 * pad - dil * (KH - 1)
    Wout = W + 2 * pad - dil * (KW - 1)
    Hp, Wp = H + 2 * pad, W + 2 * pad
    Cin_p = _round_up(Cin, LANES)
    Cp = _round_up(Cout, LANES)

    # NCHW -> NHWC + spatial halo + channel(lane) padding: one fused XLA copy.
    x_nhwc = jnp.transpose(x_nchw, (0, 2, 3, 1)).astype(jnp.float32)
    xp = jnp.pad(x_nhwc, ((0, 0), (pad, pad), (pad, pad), (0, Cin_p - Cin)))

    w_p = jnp.pad(w_hwio.astype(jnp.float32),
                  ((0, 0), (0, 0), (0, Cin_p - Cin), (0, Cp - Cout)))
    w_flat = w_p.reshape(KH * KW * Cin_p, Cp)            # tap-major, matches im2col
    gamma_p = jnp.pad(gamma.astype(jnp.float32), (0, Cp - Cout), constant_values=1.0)
    beta_p = jnp.pad(beta.astype(jnp.float32), (0, Cp - Cout))

    conv_kernel = _make_conv_stats_kernel(Hp, Wp, Cin_p, Cp, KH, KW, dil, Hout, Wout)
    y, stats = pl.pallas_call(
        conv_kernel,
        out_shape=(jax.ShapeDtypeStruct((N, Hout, Wout, Cp), jnp.float32),
                   jax.ShapeDtypeStruct((N, 2, Cp), jnp.float32)),
        grid=(N,),
        in_specs=[
            pl.BlockSpec((1, Hp, Wp, Cin_p), lambda n: (n, 0, 0, 0)),
            pl.BlockSpec((KH * KW * Cin_p, Cp), lambda n: (0, 0)),
        ],
        out_specs=(
            pl.BlockSpec((1, Hout, Wout, Cp), lambda n: (n, 0, 0, 0)),
            pl.BlockSpec((1, 2, Cp), lambda n: (n, 0, 0)),
        ),
        compiler_params=pltpu.CompilerParams(dimension_semantics=("parallel",)),
    )(xp, w_flat)

    # BN finalize: tiny per-channel (Cp,) math. E[x^2]-E[x]^2, biased var, f32.
    cnt = jnp.float32(N * Hout * Wout)
    tot = jnp.sum(stats, axis=0)                          # (2, Cp)
    mean = tot[0] / cnt
    var = jnp.maximum(tot[1] / cnt - mean * mean, 0.0)
    scale = gamma_p * lax.rsqrt(var + EPS)
    shift = beta_p - mean * scale

    out_p = pl.pallas_call(
        _bn_apply_kernel,
        out_shape=jax.ShapeDtypeStruct((N, Hout, Wout, Cp), jnp.float32),
        grid=(N,),
        in_specs=[
            pl.BlockSpec((1, Hout, Wout, Cp), lambda n: (n, 0, 0, 0)),
            pl.BlockSpec((1, 1, 1, Cp), lambda n: (0, 0, 0, 0)),
            pl.BlockSpec((1, 1, 1, Cp), lambda n: (0, 0, 0, 0)),
        ],
        out_specs=pl.BlockSpec((1, Hout, Wout, Cp), lambda n: (n, 0, 0, 0)),
        compiler_params=pltpu.CompilerParams(dimension_semantics=("parallel",)),
    )(y, scale.reshape(1, 1, 1, Cp), shift.reshape(1, 1, 1, Cp))

    out = out_p[..., :Cout]                               # drop lane padding (fused w/ transpose)
    return jnp.transpose(out, (0, 3, 1, 2))               # back to NCHW


# ----------------------------- pure-JAX reference ---------------------------------
def dilated_conv_bn_ref(x_nchw, w_hwio, gamma, beta, *,
                        stride=1, padding=0, dilation=1):
    x = jnp.transpose(x_nchw, (0, 2, 3, 1))
    y = lax.conv_general_dilated(
        x, w_hwio, window_strides=(stride, stride),
        padding=((padding, padding), (padding, padding)),
        rhs_dilation=(dilation, dilation),
        dimension_numbers=("NHWC", "HWIO", "NHWC"))
    mean = jnp.mean(y, axis=(0, 1, 2), keepdims=True)
    var = jnp.mean((y - mean) ** 2, axis=(0, 1, 2), keepdims=True)
    y = (y - mean) * lax.rsqrt(var + EPS) * gamma + beta
    return jnp.transpose(y, (0, 3, 1, 2))


if __name__ == "__main__":
    # DilatedConvBN(in_channels=4, out_channels=8, kernel_size=3, stride=1,
    #               padding=2, dilation=2) on x of shape (2, 4, 16, 16)  [NCHW]
    N, Cin, Cout, H, W = 2, 4, 8, 16, 16
    KS, STRIDE, PAD, DIL = 3, 1, 2, 2

    key = jax.random.PRNGKey(0)
    k_w, k_g, k_b, k_x = jax.random.split(key, 4)
    w_hwio = 0.1 * jax.random.normal(k_w, (KS, KS, Cin, Cout), jnp.float32)
    gamma = 1.0 + 0.1 * jax.random.normal(k_g, (Cout,), jnp.float32)
    beta = 0.1 * jax.random.normal(k_b, (Cout,), jnp.float32)
    x = jax.random.normal(k_x, (N, Cin, H, W), jnp.float32)   # NCHW, PyTorch convention

    out = dilated_conv_bn_pallas(x, w_hwio, gamma, beta,
                                 stride=STRIDE, padding=PAD, dilation=DIL)
    out = jax.block_until_ready(out)

    ref = dilated_conv_bn_ref(x, w_hwio, gamma, beta,
                              stride=STRIDE, padding=PAD, dilation=DIL)
    assert out.shape == (N, Cout, H, W), out.shape
    max_err = float(jnp.max(jnp.abs(out - ref)))
    assert jnp.allclose(out, ref, atol=5e-3, rtol=5e-3), max_err

    print("KERNEL_OK")
</pallas_src>

<mosaic_0001>
module attributes {stable_mosaic.version = 11 : i64} {
  func.func @kernel(%arg0: i32, %arg1: memref<1x20x20x128xf32, #tpu.memory_space<vmem>>, %arg2: memref<1152x128xf32, #tpu.memory_space<vmem>>, %arg3: memref<1x16x16x128xf32, #tpu.memory_space<vmem>>, %arg4: memref<1x2x128xf32, #tpu.memory_space<vmem>>) attributes {dimension_semantics = [#tpu.dimension_semantics<parallel>], iteration_bounds = array<i64: 2>, scalar_prefetch = 0 : i64, scratch_operands = 0 : i64, tpu.core_type = #tpu.core_type<tc>, window_params = [{transform_indices = @transform_0, window_bounds = array<i64: 1, 20, 20, 128>}, {pipeline_mode = #tpu.pipeline_mode<synchronous>, transform_indices = @transform_1, window_bounds = array<i64: 1152, 128>}, {transform_indices = @transform_2, window_bounds = array<i64: 1, 16, 16, 128>}, {transform_indices = @transform_3, window_bounds = array<i64: 1, 2, 128>}]} {
    %c0 = arith.constant 0 : index
    %c0_0 = arith.constant 0 : index
    %c0_1 = arith.constant 0 : index
    %c0_2 = arith.constant 0 : index
    %0 = vector.load %arg1[%c0, %c0_0, %c0_1, %c0_2] : memref<1x20x20x128xf32, #tpu.memory_space<vmem>>, vector<1x20x20x128xf32>
    %1 = vector.shape_cast %0 : vector<1x20x20x128xf32> to vector<20x20x128xf32>
    %2 = vector.extract_strided_slice %1 {offsets = [0, 0, 0], sizes = [16, 16, 128], strides = [1, 1, 1]} : vector<20x20x128xf32> to vector<16x16x128xf32>
    %3 = vector.shape_cast %2 : vector<16x16x128xf32> to vector<256x128xf32>
    %4 = vector.extract_strided_slice %1 {offsets = [0, 2, 0], sizes = [16, 16, 128], strides = [1, 1, 1]} : vector<20x20x128xf32> to vector<16x16x128xf32>
    %5 = vector.shape_cast %4 : vector<16x16x128xf32> to vector<256x128xf32>
    %6 = vector.extract_strided_slice %1 {offsets = [0, 4, 0], sizes = [16, 16, 128], strides = [1, 1, 1]} : vector<20x20x128xf32> to vector<16x16x128xf32>
    %7 = vector.shape_cast %6 : vector<16x16x128xf32> to vector<256x128xf32>
    %8 = vector.extract_strided_slice %1 {offsets = [2, 0, 0], sizes = [16, 16, 128], strides = [1, 1, 1]} : vector<20x20x128xf32> to vector<16x16x128xf32>
    %9 = vector.shape_cast %8 : vector<16x16x128xf32> to vector<256x128xf32>
    %10 = vector.extract_strided_slice %1 {offsets = [2, 2, 0], sizes = [16, 16, 128], strides = [1, 1, 1]} : vector<20x20x128xf32> to vector<16x16x128xf32>
    %11 = vector.shape_cast %10 : vector<16x16x128xf32> to vector<256x128xf32>
    %12 = vector.extract_strided_slice %1 {offsets = [2, 4, 0], sizes = [16, 16, 128], strides = [1, 1, 1]} : vector<20x20x128xf32> to vector<16x16x128xf32>
    %13 = vector.shape_cast %12 : vector<16x16x128xf32> to vector<256x128xf32>
    %14 = vector.extract_strided_slice %1 {offsets = [4, 0, 0], sizes = [16, 16, 128], strides = [1, 1, 1]} : vector<20x20x128xf32> to vector<16x16x128xf32>
    %15 = vector.shape_cast %14 : vector<16x16x128xf32> to vector<256x128xf32>
    %16 = vector.extract_strided_slice %1 {offsets = [4, 2, 0], sizes = [16, 16, 128], strides = [1, 1, 1]} : vector<20x20x128xf32> to vector<16x16x128xf32>
    %17 = vector.shape_cast %16 : vector<16x16x128xf32> to vector<256x128xf32>
    %18 = vector.extract_strided_slice %1 {offsets = [4, 4, 0], sizes = [16, 16, 128], strides = [1, 1, 1]} : vector<20x20x128xf32> to vector<16x16x128xf32>
    %19 = vector.shape_cast %18 : vector<16x16x128xf32> to vector<256x128xf32>
    %20 = tpu.concatenate %3, %5, %7, %9, %11, %13, %15, %17, %19 in 1 : vector<256x128xf32>, vector<256x128xf32>, vector<256x128xf32>, vector<256x128xf32>, vector<256x128xf32>, vector<256x128xf32>, vector<256x128xf32>, vector<256x128xf32>, vector<256x128xf32> -> vector<256x1152xf32>
    %c0_3 = arith.constant 0 : index
    %c0_4 = arith.constant 0 : index
    %21 = vector.load %arg2[%c0_3, %c0_4] : memref<1152x128xf32, #tpu.memory_space<vmem>>, vector<1152x128xf32>
    %cst = arith.constant dense<0.000000e+00> : vector<256x128xf32>
    %22 = tpu.matmul %20, %21, %cst {dimension_numbers = #tpu.dot_dimension_numbers<[1], [0], [0], [1], [0, 0, 1, 1], [], []>} : vector<256x1152xf32>, vector<1152x128xf32>, vector<256x128xf32> -> vector<256x128xf32>
    %cst_5 = arith.constant dense<0.000000e+00> : vector<128xf32>
    %23 = vector.multi_reduction <add>, %22, %cst_5 [0] : vector<256x128xf32> to vector<128xf32>
    %24 = vector.shape_cast %23 : vector<128xf32> to vector<1x128xf32>
    %25 = arith.mulf %22, %22 : vector<256x128xf32>
    %cst_6 = arith.constant dense<0.000000e+00> : vector<128xf32>
    %26 = vector.multi_reduction <add>, %25, %cst_6 [0] : vector<256x128xf32> to vector<128xf32>
    %27 = vector.shape_cast %26 : vector<128xf32> to vector<1x128xf32>
    %28 = tpu.concatenate %24, %27 in 0 : vector<1x128xf32>, vector<1x128xf32> -> vector<2x128xf32>
    %29 = vector.shape_cast %28 : vector<2x128xf32> to vector<1x2x128xf32>
    %c0_7 = arith.constant 0 : index
    %c0_8 = arith.constant 0 : index
    %c0_9 = arith.constant 0 : index
    %30 = vector.load %arg4[%c0_7, %c0_8, %c0_9] : memref<1x2x128xf32, #tpu.memory_space<vmem>>, vector<1x2x128xf32>
    tpu.vector_store %arg4[%c0_7, %c0_8, %c0_9], %29 {strides = array<i32>} : memref<1x2x128xf32, #tpu.memory_space<vmem>>, vector<1x2x128xf32>,
    %31 = vector.shape_cast %22 : vector<256x128xf32> to vector<1x16x16x128xf32>
    %c0_10 = arith.constant 0 : index
    %c0_11 = arith.constant 0 : index
    %c0_12 = arith.constant 0 : index
    %c0_13 = arith.constant 0 : index
    %32 = vector.load %arg3[%c0_10, %c0_11, %c0_12, %c0_13] : memref<1x16x16x128xf32, #tpu.memory_space<vmem>>, vector<1x16x16x128xf32>
    tpu.vector_store %arg3[%c0_10, %c0_11, %c0_12, %c0_13], %31 {strides = array<i32>} : memref<1x16x16x128xf32, #tpu.memory_space<vmem>>, vector<1x16x16x128xf32>,
    return
  }
  func.func @transform_0(%arg0: i32) -> (i32, i32, i32, i32) {
    %c0_i32 = arith.constant 0 : i32
    %c0_i32_0 = arith.constant 0 : i32
    %c0_i32_1 = arith.constant 0 : i32
    %c0_i32_2 = arith.constant 0 : i32
    return %arg0, %c0_i32, %c0_i32_0, %c0_i32_1 : i32, i32, i32, i32
  }
  func.func @transform_1(%arg0: i32) -> (i32, i32) {
    %c0_i32 = arith.constant 0 : i32
    %c0_i32_0 = arith.constant 0 : i32
    %c0_i32_1 = arith.constant 0 : i32
    return %c0_i32, %c0_i32_0 : i32, i32
  }
  func.func @transform_2(%arg0: i32) -> (i32, i32, i32, i32) {
    %c0_i32 = arith.constant 0 : i32
    %c0_i32_0 = arith.constant 0 : i32
    %c0_i32_1 = arith.constant 0 : i32
    %c0_i32_2 = arith.constant 0 : i32
    return %arg0, %c0_i32, %c0_i32_0, %c0_i32_1 : i32, i32, i32, i32
  }
  func.func @transform_3(%arg0: i32) -> (i32, i32, i32) {
    %c0_i32 = arith.constant 0 : i32
    %c0_i32_0 = arith.constant 0 : i32
    %c0_i32_1 = arith.constant 0 : i32
    return %arg0, %c0_i32, %c0_i32_0 : i32, i32, i32
  }
}

</mosaic_0001>

<bundles_post_ra>
// kernel: tpu_custom_call.1
= control target key start
LH: loop header
LB: loop body
LE: loop exit
PB: predicated region body
PF: predicated region fallthrough
CT: control target
= control target key end

     0   :  { %9 = vsyncpa [#allocation3], 0  ;;  %s3768_s0 = inlined_call_operand.vmem [shape: f32[2,20,20,128], index: 0, kind: input, shape index: {}]   ;;  %s3769_s1 = inlined_call_operand.vmem [shape: f32[1152,128], index: 1, kind: input, shape index: {}]   ;;  %s3770_s2 = inlined_call_operand.hbm [shape: f32[2,16,16,128], index: 2, kind: output, shape index: {0}]   ;;  %s3771_s3 = inlined_call_operand.hbm [shape: f32[2,2,128], index: 3, kind: output, shape index: {1}]  }
   0x1   :  { %11 = vsyncpa [#allocation3 + $0x1], 0 }
   0x2   :  { %12 = vsyncpa [#allocation5], 0 }
   0x3   :  { %14 = vsyncpa [#allocation5 + $0x1], 0  ;;  %s2266_s12 = smov 0   ;;  %s2268_s13 = smov 0  }
   0x4   :  { %s2270_s14 = smov 0   ;;  %s2272_s15 = smov 0  }
   0x5 LB: > { %s2287_s16 = sadd.s32 4294967295, %s2242_s15   ;;  %s2014_s17 = sadd.s32 4294967294, %s2242_s15   ;;  %s2242_s15 = sphi %s2272_s15, %s3915_s15   ;;  %s2238_s14 = sphi %s2270_s14, %s3914_s14   ;;  %s2234_s13 = sphi %s2268_s13, %s3913_s13   ;;  %s2230_s12 = sphi %s2266_s12, %s3912_s12  }
   0x6   : > { %s2291_s18 = sadd.s32 1, %s2242_s15   ;;  %s74_s19 = sadd.s32 1, %s2238_s14 }
   0x7   : > { %s71_s20 = ssub.s32 %s2242_s15, %s2291_s18  ;;  %p84_p0 = scmp.ne.s32.totalorder %s2238_s14, %s2234_s13 }
   0x8   : > { %p72_p1 = scmp.eq.s32.totalorder %s71_s20, 0  ;;  %p85_p2 = scmp.eq.s32.totalorder %s2287_s16, 1 }
   0x9   : > { %p90_p3 = scmp.ne.s32.totalorder %s2234_s13, %s2230_s12  ;;  %p91_p4 = scmp.eq.s32.totalorder %s2014_s17, 1 }
   0xa   : > { %s2302_s21 = scalar_select %p72_p1, %s2238_s14, %s74_s19  }
   0xb   : > { %p2304_p5 = por %p85_p2, %p84_p0  ;;  %p2308_p6 = por %p91_p4, %p90_p3 }
   0xc   : > { %p2017_p7 = scmp.ge.s32.totalorder %s2242_s15, 1  ;;  %p146_p8 = scmp.lt.s32.totalorder %s2242_s15, 3 }
   0xe   : > { %p147_p9 = pnand %p2017_p7, %p146_p8 }
  0x10   : > { %150 = sbr.rel (%p147_p9) target bundleno = 779 (0x30b), region = 28 }
  0x15   : > { %v597_v0 = vld [vmem:[%s3769_s1 + $0x78] sm:$0xff]  ;;  %v596_v1 = vld [vmem:[%s3769_s1 + $0x70] sm:$0xff]  ;;  %v595_v2 = vld [vmem:[%s3769_s1 + $0x68] sm:$0xff]  ;;  %p175_p10 = scmp.lt.s32.totalorder %s2287_s16, 1  ;;  %vm288_vm0 = vcmask 1045504   ;;  %vm401_vm1 = vcmask 1043456  }
  0x16   : > { %2029 = vmatpush.msra.mxu1 %v597_v0  ;;  %2030 = vmatpush.msra.mxu2 %v597_v0  ;;  %v594_v3 = vld [vmem:[%s3769_s1 + $0x60] sm:$0xff]  ;;  %v593_v4 = vld [vmem:[%s3769_s1 + $0x58] sm:$0xff]  ;;  %v592_v5 = vld [vmem:[%s3769_s1 + $0x50] sm:$0xff]  ;;  %s3568_s26 = sand.u32 1, %s2234_s13   ;;  %s2168_s17 = scalar_lea.hbm %s3770_s2, 512 }
  0x17   : > { %2031 = vmatpush.msra.mxu3 %v597_v0  ;;  %726 = vmatpush.msra.mxu0 %v597_v0  ;;  %v591_v6 = vld [vmem:[%s3769_s1 + $0x48] sm:$0xff]  ;;  %v590_v7 = vld [vmem:[%s3769_s1 + $0x40] sm:$0xff]  ;;  %v589_v8 = vld [vmem:[%s3769_s1 + $0x38] sm:$0xff]  ;;  %s176_s28 = scalar_select %p175_p10, %s2287_s16, 1 }
  0x18   : > { %2032 = vmatpush.msra.mxu1 %v596_v1  ;;  %2033 = vmatpush.msra.mxu2 %v596_v1  ;;  %v588_v9 = vld [vmem:[%s3769_s1 + $0x30] sm:$0xff]  ;;  %v587_v10 = vld [vmem:[%s3769_s1 + $0x28] sm:$0xff]  ;;  %v586_v11 = vld [vmem:[%s3769_s1 + $0x20] sm:$0xff]  ;;  %s2018_s27 = sshll.u32 %s3568_s26, 8  ;;  %s1885_s7 = scalar_lea.sflag [#allocation3], %s3568_s26 }
  0x19   : > { %2034 = vmatpush.msra.mxu3 %v596_v1  ;;  %727 = vmatpush.msra.mxu0 %v596_v1  ;;  %v585_v12 = vld [vmem:[%s3769_s1 + $0x18] sm:$0xff]  ;;  %s2077_s6 = smul.u32 480, %s176_s28  ;;  %v584_v13 = vld [vmem:[%s3769_s1 + $0x10] sm:$0xff]  ;;  %v583_v14 = vld [vmem:[%s3769_s1 + $0x8] sm:$0xff]  ;;  %s3577_s28 = scalar_lea.vmem [#allocation2], %s2018_s27 }
  0x1a   : > { %2035 = vmatpush.msra.mxu1 %v595_v2  ;;  %2036 = vmatpush.msra.mxu2 %v595_v2  ;;  %v582_v15 = vld [vmem:[%s3769_s1] sm:$0xff]  ;;  %v629_v18 = vld [vmem:[%s3769_s1 + $0x178] sm:$0xff]  ;;  %v628_v22 = vld [vmem:[%s3769_s1 + $0x170] sm:$0xff]  ;;  %s1902_s5 = sshll.u32 %s3577_s28, 4  ;;  %s1903_s5 = int_to_ptr.vmem [resolvable:$true] %s1902_s5 }
  0x1b   : > { %2037 = vmatpush.msra.mxu3 %v595_v2  ;;  %728 = vmatpush.msra.mxu0 %v595_v2  ;;  %s2364_s19 = scalar_lea.vmem %s3768_s0, %s2077_s6  ;;  %v613_v20 = vld [vmem:[%s3769_s1 + $0xf8] sm:$0xff]  ;;  %v612_v23 = vld [vmem:[%s3769_s1 + $0xf0] sm:$0xff]  ;;  %v627_v25 = vld [vmem:[%s3769_s1 + $0x168] sm:$0xff] }
  0x1c   : > { %2038 = vmatpush.msra.mxu1 %v594_v3  ;;  %2039 = vmatpush.msra.mxu2 %v594_v3  ;;  %v2370_v16 = vld [vmem:[%s2364_s19 + $0x60] sm:$0xff]  ;;  %v645_v21 = vld [vmem:[%s3769_s1 + $0x1f8] sm:$0xff]  ;;  %v644_v24 = vld [vmem:[%s3769_s1 + $0x1f0] sm:$0xff] }
  0x1d   : > { %2040 = vmatpush.msra.mxu3 %v594_v3  ;;  %729 = vmatpush.msra.mxu0 %v594_v3  ;;  %v2373_v17 = vld [vmem:[%s2364_s19 + $0xc0] sm:$0xff]  ;;  %v611_v27 = vld [vmem:[%s3769_s1 + $0xe8] sm:$0xff]  ;;  %v661_v29 = vld [vmem:[%s3769_s1 + $0x278] sm:$0xff] }
  0x1e   : > { %2041 = vmatpush.msra.mxu1 %v593_v4  ;;  %2042 = vmatpush.msra.mxu2 %v593_v4  ;;  %v216_v19 = vld [vmem:[%s2364_s19 + $0x120] sm:$0xff]  ;;  %v643_v28 = vld [vmem:[%s3769_s1 + $0x1e8] sm:$0xff]  ;;  %v660_v35 = vld [vmem:[%s3769_s1 + $0x270] sm:$0xff] }
  0x1f   : > { %2043 = vmatpush.msra.mxu3 %v593_v4  ;;  %730 = vmatpush.msra.mxu0 %v593_v4  ;;  %v2400_v26 = vld [vmem:[%s2364_s19] sm:$0xff]  ;;  %v2412_v30 = vld [vmem:[%s2364_s19 + $0x68] sm:$0xff]  ;;  %v625_v37 = vld [vmem:[%s3769_s1 + $0x158] sm:$0xff] }
  0x20   : > { %2044 = vmatpush.msra.mxu1 %v592_v5  ;;  %2045 = vmatpush.msra.mxu2 %v592_v5  ;;  %v2415_v31 = vld [vmem:[%s2364_s19 + $0xc8] sm:$0xff]  ;;  %v626_v32 = vld [vmem:[%s3769_s1 + $0x160] sm:$0xff]  ;;  %v641_v38 = vld [vmem:[%s3769_s1 + $0x1d8] sm:$0xff] }
  0x21   : > { %2046 = vmatpush.msra.mxu3 %v592_v5  ;;  %731 = vmatpush.msra.mxu0 %v592_v5  ;;  %v642_v33 = vld [vmem:[%s3769_s1 + $0x1e0] sm:$0xff]  ;;  %v217_v34 = vld [vmem:[%s2364_s19 + $0x128] sm:$0xff]  ;;  %v609_v40 = vld [vmem:[%s3769_s1 + $0xd8] sm:$0xff] }
  0x22   : > { %2047 = vmatpush.msra.mxu1 %v591_v6  ;;  %2048 = vmatpush.msra.mxu2 %v591_v6  ;;  %v610_v36 = vld [vmem:[%s3769_s1 + $0xe0] sm:$0xff]  ;;  %v659_v39 = vld [vmem:[%s3769_s1 + $0x268] sm:$0xff]  ;;  %v624_v41 = vld [vmem:[%s3769_s1 + $0x150] sm:$0xff] }
  0x23   : > { %2049 = vmatpush.msra.mxu3 %v591_v6  ;;  %732 = vmatpush.msra.mxu0 %v591_v6  ;;  %v2449_v42 = vld [vmem:[%s2364_s19 + $0x8] sm:$0xff]  ;;  %v640_v43 = vld [vmem:[%s3769_s1 + $0x1d0] sm:$0xff]  ;;  %v658_v44 = vld [vmem:[%s3769_s1 + $0x260] sm:$0xff] }
  0x24   : > { %2050 = vmatpush.msra.mxu1 %v590_v7  ;;  %2051 = vmatpush.msra.mxu2 %v590_v7  ;;  %v608_v45 = vld [vmem:[%s3769_s1 + $0xd0] sm:$0xff]  ;;  %v2461_v46 = vld [vmem:[%s2364_s19 + $0x78] sm:$0xff]  ;;  %v623_v48 = vld [vmem:[%s3769_s1 + $0x148] sm:$0xff] }
  0x25   : > { %2052 = vmatpush.msra.mxu3 %v590_v7  ;;  %733 = vmatpush.msra.mxu0 %v590_v7  ;;  %v2464_v47 = vld [vmem:[%s2364_s19 + $0xd8] sm:$0xff]  ;;  %v639_v49 = vld [vmem:[%s3769_s1 + $0x1c8] sm:$0xff]  ;;  %v622_v53 = vld [vmem:[%s3769_s1 + $0x140] sm:$0xff] }
  0x26   : > { %2053 = vmatpush.msra.mxu1 %v589_v8  ;;  %2054 = vmatpush.msra.mxu2 %v589_v8  ;;  %v219_v50 = vld [vmem:[%s2364_s19 + $0x138] sm:$0xff]  ;;  %v607_v52 = vld [vmem:[%s3769_s1 + $0xc8] sm:$0xff]  ;;  %v638_v54 = vld [vmem:[%s3769_s1 + $0x1c0] sm:$0xff] }
  0x27   : > { %2055 = vmatpush.msra.mxu3 %v589_v8  ;;  %734 = vmatpush.msra.mxu0 %v589_v8  ;;  %v657_v51 = vld [vmem:[%s3769_s1 + $0x258] sm:$0xff]  ;;  %v656_v55 = vld [vmem:[%s3769_s1 + $0x250] sm:$0xff]  ;;  %v606_v56 = vld [vmem:[%s3769_s1 + $0xc0] sm:$0xff] }
  0x28   : > { %2056 = vmatpush.msra.mxu1 %v588_v9  ;;  %2057 = vmatpush.msra.mxu2 %v588_v9  ;;  %v621_v57 = vld [vmem:[%s3769_s1 + $0x138] sm:$0xff]  ;;  %v655_v60 = vld [vmem:[%s3769_s1 + $0x248] sm:$0xff]  ;;  %v2510_v62 = vld [vmem:[%s2364_s19 + $0x80] sm:$0xff] }
  0x29   : > { %2058 = vmatpush.msra.mxu3 %v588_v9  ;;  %735 = vmatpush.msra.mxu0 %v588_v9  ;;  %v2498_v58 = vld [vmem:[%s2364_s19 + $0x18] sm:$0xff]  ;;  %v2513_v63 = vld [vmem:[%s2364_s19 + $0xe0] sm:$0xff]  ;;  %v620_v0 = vld [vmem:[%s3769_s1 + $0x130] sm:$0xff] }
  0x2a   : > { %2059 = vmatpush.msra.mxu1 %v587_v10  ;;  %2060 = vmatpush.msra.mxu2 %v587_v10  ;;  %v637_v59 = vld [vmem:[%s3769_s1 + $0x1b8] sm:$0xff]  ;;  %v636_v1 = vld [vmem:[%s3769_s1 + $0x1b0] sm:$0xff]  ;;  %v2523_v2 = vld [vmem:[%s2364_s19 + $0x140] sm:$0xff] }
  0x2b   : > { %2061 = vmatpush.msra.mxu3 %v587_v10  ;;  %736 = vmatpush.msra.mxu0 %v587_v10  ;;  %v605_v61 = vld [vmem:[%s3769_s1 + $0xb8] sm:$0xff]  ;;  %v654_v3 = vld [vmem:[%s3769_s1 + $0x240] sm:$0xff]  ;;  %v604_v4 = vld [vmem:[%s3769_s1 + $0xb0] sm:$0xff] }
  0x2c   : > { %2062 = vmatpush.msra.mxu1 %v586_v11  ;;  %2063 = vmatpush.msra.mxu2 %v586_v11  ;;  %v619_v5 = vld [vmem:[%s3769_s1 + $0x128] sm:$0xff]  ;;  %v653_v7 = vld [vmem:[%s3769_s1 + $0x238] sm:$0xff]  ;;  %v618_v9 = vld [vmem:[%s3769_s1 + $0x120] sm:$0xff] }
  0x2d   : > { %2064 = vmatpush.msra.mxu3 %v586_v11  ;;  %737 = vmatpush.msra.mxu0 %v586_v11  ;;  %v635_v6 = vld [vmem:[%s3769_s1 + $0x1a8] sm:$0xff]  ;;  %v2550_v10 = vld [vmem:[%s2364_s19 + $0x20] sm:$0xff] }
  0x2e   : > { %2065 = vmatpush.msra.mxu1 %v585_v12  ;;  %2066 = vmatpush.msra.mxu2 %v585_v12  ;;  %v603_v8 = vld [vmem:[%s3769_s1 + $0xa8] sm:$0xff]  ;;  %v634_v11 = vld [vmem:[%s3769_s1 + $0x1a0] sm:$0xff] }
  0x2f   : > { %2067 = vmatpush.msra.mxu3 %v585_v12  ;;  %738 = vmatpush.msra.mxu0 %v585_v12  ;;  %v652_v12 = vld [vmem:[%s3769_s1 + $0x230] sm:$0xff] }
  0x30   : > { %2068 = vmatpush.msra.mxu1 %v584_v13  ;;  %2069 = vmatpush.msra.mxu2 %v584_v13 }
  0x31   : > { %2070 = vmatpush.msra.mxu3 %v584_v13  ;;  %739 = vmatpush.msra.mxu0 %v584_v13  ;;  %v602_v13 = vld [vmem:[%s3769_s1 + $0xa0] sm:$0xff] }
  0x32   : > { %2071 = vmatpush.msra.mxu1 %v583_v14  ;;  %2072 = vmatpush.msra.mxu2 %v583_v14 }
  0x33   : > { %2073 = vmatpush.msra.mxu3 %v583_v14  ;;  %740 = vmatpush.msra.mxu0 %v583_v14  ;;  %v2562_v14 = vld [vmem:[%s2364_s19 + $0x90] sm:$0xff] }
  0x34   : > { %2074 = vmatpush.msra.mxu1 %v582_v15  ;;  %2075 = vmatpush.msra.mxu2 %v582_v15 }
  0x35   : > { %766 = vmatmul.f32.vlgmr.msra.gmra.mxu1 %v2370_v16  ;;  %790 = vmatmul.f32.vlgmr.msra.gmra.mxu2 %v2373_v17 }
  0x36   : > { %952 = vmatpush.msrb.mxu2 %v629_v18  ;;  %2076 = vmatpush.msra.mxu3 %v582_v15  ;;  %v617_v18 = vld [vmem:[%s3769_s1 + $0x118] sm:$0xff] }
  0x37   : > { %814 = vmatmul.f32.vlgmr.msra.gmra.mxu3 %v216_v19  ;;  %839 = vmatpush.msrb.mxu1 %v613_v20  ;;  %v633_v19 = vld [vmem:[%s3769_s1 + $0x198] sm:$0xff]  ;;  %v222_v20 = vld [vmem:[%s2364_s19 + $0x150] sm:$0xff] }
  0x38   : > { %1065 = vmatpush.msrb.mxu3 %v645_v21  ;;  %953 = vmatpush.msrb.mxu2 %v628_v22  ;;  %v651_v21 = vld [vmem:[%s3769_s1 + $0x228] sm:$0xff]  ;;  %v601_v22 = vld [vmem:[%s3769_s1 + $0x98] sm:$0xff] }
  0x39   : > { %840 = vmatpush.msrb.mxu1 %v612_v23  ;;  %741 = vmatpush.msra.mxu0 %v582_v15  ;;  %v2565_v15 = vld [vmem:[%s2364_s19 + $0xf0] sm:$0xff] }
  0x3a   : > { %1066 = vmatpush.msrb.mxu3 %v644_v24  ;;  %954 = vmatpush.msrb.mxu2 %v627_v25  ;;  %v616_v23 = vld [vmem:[%s3769_s1 + $0x110] sm:$0xff]  ;;  %v650_v25 = vld [vmem:[%s3769_s1 + $0x220] sm:$0xff] }
  0x3b   : > { %742 = vmatmul.f32.vlgmr.msra.gmra.mxu0 %v2400_v26  ;;  %841 = vmatpush.msrb.mxu1 %v611_v27  ;;  %v632_v24 = vld [vmem:[%s3769_s1 + $0x190] sm:$0xff] }
  0x3c   : > { %1067 = vmatpush.msrb.mxu3 %v643_v28  ;;  %1178 = vmatpush.msrb.mxu0 %v661_v29  ;;  %v600_v27 = vld [vmem:[%s3769_s1 + $0x90] sm:$0xff]  ;;  %v615_v28 = vld [vmem:[%s3769_s1 + $0x108] sm:$0xff] }
  0x3d   : > { %769 = vmatmul.f32.gmra.mxu1 %v2412_v30  ;;  %793 = vmatmul.f32.gmra.mxu2 %v2415_v31  ;;  %v2599_v29 = vld [vmem:[%s2364_s19 + $0x30] sm:$0xff] }
  0x3e   : > { %955 = vmatpush.msrb.mxu2 %v626_v32  ;;  %1068 = vmatpush.msrb.mxu3 %v642_v33  ;;  %v631_v32 = vld [vmem:[%s3769_s1 + $0x188] sm:$0xff]  ;;  %v649_v33 = vld [vmem:[%s3769_s1 + $0x218] sm:$0xff] }
  0x3f   : > { %817 = vmatmul.f32.gmra.mxu3 %v217_v34  ;;  %1179 = vmatpush.msrb.mxu0 %v660_v35  ;;  %v599_v34 = vld [vmem:[%s3769_s1 + $0x88] sm:$0xff]  ;;  %v2611_v35 = vld [vmem:[%s2364_s19 + $0x98] sm:$0xff] }
  0x40   : > { %842 = vmatpush.msrb.mxu1 %v610_v36  ;;  %956 = vmatpush.msrb.mxu2 %v625_v37  ;;  %v2614_v36 = vld [vmem:[%s2364_s19 + $0xf8] sm:$0xff]  ;;  %v614_v37 = vld [vmem:[%s3769_s1 + $0x100] sm:$0xff] }
  0x41   : > { %1069 = vmatpush.msrb.mxu3 %v641_v38  ;;  %1180 = vmatpush.msrb.mxu0 %v659_v39  ;;  %v630_v38 = vld [vmem:[%s3769_s1 + $0x180] sm:$0xff]  ;;  %v2624_v39 = vld [vmem:[%s2364_s19 + $0x158] sm:$0xff] }
  0x42   : > { %843 = vmatpush.msrb.mxu1 %v609_v40  ;;  %957 = vmatpush.msrb.mxu2 %v624_v41  ;;  %v648_v40 = vld [vmem:[%s3769_s1 + $0x210] sm:$0xff]  ;;  %v598_v41 = vld [vmem:[%s3769_s1 + $0x80] sm:$0xff] }
  0x43   : > { %745 = vmatmul.f32.gmra.mxu0 %v2449_v42  ;;  %1070 = vmatpush.msrb.mxu3 %v640_v43  ;;  %v693_v43 = vld [vmem:[%s3769_s1 + $0x378] sm:$0xff] }
  0x44   : > { %1181 = vmatpush.msrb.mxu0 %v658_v44  ;;  %844 = vmatpush.msrb.mxu1 %v608_v45  ;;  %v647_v44 = vld [vmem:[%s3769_s1 + $0x208] sm:$0xff]  ;;  %v709_v45 = vld [vmem:[%s3769_s1 + $0x3f8] sm:$0xff] }
  0x45   : > { %772 = vmatmul.f32.gmra.mxu1 %v2461_v46  ;;  %796 = vmatmul.f32.gmra.mxu2 %v2464_v47 }
  0x46   : > { %958 = vmatpush.msrb.mxu2 %v623_v48  ;;  %1071 = vmatpush.msrb.mxu3 %v639_v49  ;;  %v677_v48 = vld [vmem:[%s3769_s1 + $0x2f8] sm:$0xff] }
  0x47   : > { %820 = vmatmul.f32.gmra.mxu3 %v219_v50  ;;  %1182 = vmatpush.msrb.mxu0 %v657_v51  ;;  %v2648_v49 = vld [vmem:[%s2364_s19 + $0x38] sm:$0xff]  ;;  %v646_v50 = vld [vmem:[%s3769_s1 + $0x200] sm:$0xff]  ;;  %v2654_v51 = vld [vmem:[%s2364_s19 + $0xa8] sm:$0xff] }
  0x48   : > { %845 = vmatpush.msrb.mxu1 %v607_v52  ;;  %959 = vmatpush.msrb.mxu2 %v622_v53  ;;  %v2657_v52 = vld [vmem:[%s2364_s19 + $0x108] sm:$0xff]  ;;  %v725_v53 = vld [vmem:[%s3769_s1 + $0x478] sm:$0xff] }
  0x49   : > { %1072 = vmatpush.msrb.mxu3 %v638_v54  ;;  %1183 = vmatpush.msrb.mxu0 %v656_v55  ;;  %v2664_v54 = vld [vmem:[%s2364_s19 + $0x168] sm:$0xff]  ;;  %v692_v55 = vld [vmem:[%s3769_s1 + $0x370] sm:$0xff] }
  0x4a   : > { %846 = vmatpush.msrb.mxu1 %v606_v56  ;;  %960 = vmatpush.msrb.mxu2 %v621_v57  ;;  %v708_v56 = vld [vmem:[%s3769_s1 + $0x3f0] sm:$0xff] }
  0x4b   : > { %748 = vmatmul.f32.gmra.mxu0 %v2498_v58  ;;  %1073 = vmatpush.msrb.mxu3 %v637_v59  ;;  %v676_v57 = vld [vmem:[%s3769_s1 + $0x2f0] sm:$0xff]  ;;  %v2679_v59 = vld [vmem:[%s2364_s19 + $0x48] sm:$0xff] }
  0x4c   : > { %1184 = vmatpush.msrb.mxu0 %v655_v60  ;;  %847 = vmatpush.msrb.mxu1 %v605_v61  ;;  %v2682_v60 = vld [vmem:[%s2364_s19 + $0xb0] sm:$0xff] }
  0x4d   : > { %775 = vmatmul.f32.gmra.mxu1 %v2510_v62  ;;  %799 = vmatmul.f32.gmra.mxu2 %v2513_v63  ;;  %v2685_v61 = vld [vmem:[%s2364_s19 + $0x110] sm:$0xff] }
  0x4e   : > { %961 = vmatpush.msrb.mxu2 %v620_v0  ;;  %1074 = vmatpush.msrb.mxu3 %v636_v1  ;;  %v2689_v0 = vld [vmem:[%s2364_s19 + $0x170] sm:$0xff]  ;;  %v289_v1 = vrot.slane %v2400_v26, 2 }
  0x4f   : > { %823 = vmatmul.f32.gmra.mxu3 %v2523_v2  ;;  %1185 = vmatpush.msrb.mxu0 %v654_v3  ;;  %v402_v3 = vrot.slane %v2400_v26, 4  ;;  %v182_v26 = vld [vmem:[%s2364_s19 + $0x10] sm:$0xf] }
  0x50   : > { %848 = vmatpush.msrb.mxu1 %v604_v4  ;;  %962 = vmatpush.msrb.mxu2 %v619_v5  ;;  %v290_v4 = vrot.slane %v2449_v42, 2  ;;  %v403_v5 = vrot.slane %v2449_v42, 4  ;;  %v299_v42 = vrot.slane %v2599_v29, 2 }
  0x51   : > { %1075 = vmatpush.msrb.mxu3 %v635_v6  ;;  %1186 = vmatpush.msrb.mxu0 %v653_v7  ;;  %v724_v6 = vld [vmem:[%s3769_s1 + $0x470] sm:$0xff] }
  0x52   : > { %849 = vmatpush.msrb.mxu1 %v603_v8  ;;  %963 = vmatpush.msrb.mxu2 %v618_v9  ;;  %v2702_v7 = vld [vmem:[%s2364_s19 + $0x50] sm:$0xff]  ;;  %v291_v8 = vsel %vm288_vm0, %v289_v1, %v290_v4  ;;  %v404_v9 = vsel %vm401_vm1, %v402_v3, %v403_v5  ;;  %v412_v3 = vrot.slane %v2599_v29, 4 }
  0x53   : > { %751 = vmatmul.f32.gmra.mxu0 %v2550_v10  ;;  %1076 = vmatpush.msrb.mxu3 %v634_v11  ;;  %v300_v11 = vrot.slane %v2648_v49, 2 }
  0x54   : > { %1187 = vmatpush.msrb.mxu0 %v652_v12  ;;  %850 = vmatpush.msrb.mxu1 %v602_v13  ;;  %v691_v12 = vld [vmem:[%s3769_s1 + $0x368] sm:$0xff]  ;;  %v292_v13 = vrot.slane %v182_v26, 2 }
  0x55   : > { %778 = vmatmul.f32.gmra.mxu1 %v2562_v14  ;;  %802 = vmatmul.f32.gmra.mxu2 %v2565_v15 }
  0x56   : > { %964 = vmatpush.msrb.mxu2 %v617_v18  ;;  %1077 = vmatpush.msrb.mxu3 %v633_v19  ;;  %v405_v18 = vrot.slane %v182_v26, 4  ;;  %v707_v19 = vld [vmem:[%s3769_s1 + $0x3e8] sm:$0xff] }
  0x57   : > { %826 = vmatmul.f32.gmra.mxu3 %v222_v20  ;;  %1188 = vmatpush.msrb.mxu0 %v651_v21  ;;  %v675_v20 = vld [vmem:[%s3769_s1 + $0x2e8] sm:$0xff]  ;;  %v301_v21 = vsel %vm288_vm0, %v299_v42, %v300_v11  ;;  %v705_v42 = vld [vmem:[%s3769_s1 + $0x3d8] sm:$0xff] }
  0x58   : > { %851 = vmatpush.msrb.mxu1 %v601_v22  ;;  %965 = vmatpush.msrb.mxu2 %v616_v23  ;;  %v2722_v22 = vld [vmem:[%s2364_s19 + $0x40] sm:$0xf]  ;;  %v293_v23 = vsel %vm288_vm0, %v290_v4, %v292_v13  ;;  %v413_v4 = vrot.slane %v2648_v49, 4  ;;  %v2783_v13 = vld [vmem:[%s2364_s19 + $0x70] sm:$0xf] }
  0x59   : > { %1078 = vmatpush.msrb.mxu3 %v632_v24  ;;  %1189 = vmatpush.msrb.mxu0 %v650_v25  ;;  %v406_v24 = vsel %vm401_vm1, %v403_v5, %v405_v18  ;;  %v302_v25 = vrot.slane %v2722_v22, 2  ;;  %v722_v5 = vld [vmem:[%s3769_s1 + $0x460] sm:$0xff]  ;;  %v415_v26 = vrot.slane %v2722_v22, 4  ;;  %v721_v22 = vld [vmem:[%s3769_s1 + $0x458] sm:$0xff] }
  0x5a   : > { %852 = vmatpush.msrb.mxu1 %v600_v27  ;;  %966 = vmatpush.msrb.mxu2 %v615_v28  ;;  %v294_v27 = vrot.slane %v2498_v58, 2  ;;  %v407_v28 = vrot.slane %v2498_v58, 4  ;;  %v185_v58 = vld [vmem:[%s2364_s19 + $0x28] sm:$0xf] }
  0x5b   : > { %754 = vmatmul.f32.gmra.mxu0 %v2599_v29  ;;  %1079 = vmatpush.msrb.mxu3 %v631_v32  ;;  %v295_v32 = vrot.slane %v2550_v10, 2  ;;  %v2786_v18 = vsel %vm401_vm1, %v413_v4, %v415_v26 }
  0x5c   : > { %1190 = vmatpush.msrb.mxu0 %v649_v33  ;;  %853 = vmatpush.msrb.mxu1 %v599_v34  ;;  %v408_v33 = vrot.slane %v2550_v10, 4  ;;  %v723_v34 = vld [vmem:[%s3769_s1 + $0x468] sm:$0xff]  ;;  %v305_v10 = vrot.slane %v2702_v7, 2 }
  0x5d   : > { %781 = vmatmul.f32.gmra.mxu1 %v2611_v35  ;;  %805 = vmatmul.f32.gmra.mxu2 %v2614_v36 }
  0x5e   : > { %967 = vmatpush.msrb.mxu2 %v614_v37  ;;  %1080 = vmatpush.msrb.mxu3 %v630_v38  ;;  %v303_v37 = vsel %vm288_vm0, %v300_v11, %v302_v25  ;;  %v296_v38 = vsel %vm288_vm0, %v294_v27, %v295_v32  ;;  %v688_v25 = vld [vmem:[%s3769_s1 + $0x350] sm:$0xff] }
  0x5f   : > { %829 = vmatmul.f32.gmra.mxu3 %v2624_v39  ;;  %1191 = vmatpush.msrb.mxu0 %v648_v40  ;;  %v409_v40 = vsel %vm401_vm1, %v407_v28, %v408_v33  ;;  %v704_v28 = vld [vmem:[%s3769_s1 + $0x3d0] sm:$0xff] }
  0x60   : > { %854 = vmatpush.msrb.mxu1 %v598_v41  ;;  %1404 = vmatpush.msra.mxu2 %v693_v43  ;;  %v304_v41 = vrot.slane %v2679_v59, 2  ;;  %v690_v43 = vld [vmem:[%s3769_s1 + $0x360] sm:$0xff] }
  0x61   : > { %1192 = vmatpush.msrb.mxu0 %v647_v44  ;;  %1517 = vmatpush.msra.mxu3 %v709_v45  ;;  %v297_v44 = vrot.slane %v185_v58, 2  ;;  %v410_v45 = vrot.slane %v185_v58, 4  ;;  %v423_v58 = vrot.slane %v2412_v30, 4 }
  0x62   : > { %1291 = vmatpush.msra.mxu1 %v677_v48  ;;  %1405 = vmatpush.msra.mxu2 %v692_v55  ;;  %v706_v48 = vld [vmem:[%s3769_s1 + $0x3e0] sm:$0xff]  ;;  %v191_v55 = vld [vmem:[%s2364_s19 + $0x58] sm:$0xf] }
  0x63   : > { %757 = vmatmul.f32.gmra.mxu0 %v2648_v49  ;;  %1518 = vmatpush.msra.mxu3 %v708_v56  ;;  %v298_v56 = vsel %vm288_vm0, %v295_v32, %v297_v44  ;;  %v307_v1 = vrot.slane %v191_v55, 2  ;;  %v420_v27 = vrot.slane %v191_v55, 4 }
  0x64   : > { %1193 = vmatpush.msrb.mxu0 %v646_v50  ;;  %1292 = vmatpush.msra.mxu1 %v676_v57  ;;  %v674_v50 = vld [vmem:[%s3769_s1 + $0x2e0] sm:$0xff]  ;;  %v411_v57 = vsel %vm401_vm1, %v408_v33, %v410_v45  ;;  %v672_v33 = vld [vmem:[%s3769_s1 + $0x2d0] sm:$0xff]  ;;  %v687_v45 = vld [vmem:[%s3769_s1 + $0x348] sm:$0xff] }
  0x65   : > { %784 = vmatmul.f32.gmra.mxu1 %v2654_v51  ;;  %808 = vmatmul.f32.gmra.mxu2 %v2657_v52 }
  0x66   : > { %1630 = vmatpush.msra.mxu0 %v725_v53  ;;  %1406 = vmatpush.msra.mxu2 %v691_v12  ;;  %v306_v53 = vsel %vm288_vm0, %v304_v41, %v305_v10  ;;  %v673_v12 = vld [vmem:[%s3769_s1 + $0x2d8] sm:$0xff]  ;;  %v720_v41 = vld [vmem:[%s3769_s1 + $0x450] sm:$0xff] }
  0x67   : > { %832 = vmatmul.f32.gmra.mxu3 %v2664_v54  ;;  %1293 = vmatpush.msra.mxu1 %v675_v20  ;;  %v417_v20 = vrot.slane %v2679_v59, 4 }
  0x68   : > { %1631 = vmatpush.msra.mxu0 %v724_v6  ;;  %1519 = vmatpush.msra.mxu3 %v707_v19  ;;  %v308_v6 = vsel %vm288_vm0, %v305_v10, %v307_v1  ;;  %v312_v19 = vrot.slane %v2783_v13, 2  ;;  %v2867_v1 = vld [vmem:[%s2364_s19 + $0xa0] sm:$0xf] }
  0x69   : > { %1407 = vmatpush.msra.mxu2 %v690_v43  ;;  %1294 = vmatpush.msra.mxu1 %v674_v50  ;;  %v703_v50 = vld [vmem:[%s3769_s1 + $0x3c8] sm:$0xff] }
  0x6a   : > { %1632 = vmatpush.msra.mxu0 %v723_v34  ;;  %1520 = vmatpush.msra.mxu3 %v706_v48  ;;  %v2821_v34 = vld [vmem:[%s2364_s19 + $0x88] sm:$0xf]  ;;  %v425_v48 = vrot.slane %v2783_v13, 4 }
  0x6b   : > { %760 = vmatmul.f32.gmra.mxu0 %v2679_v59  ;;  %1295 = vmatpush.msra.mxu1 %v673_v12 }
  0x6c   : > { %1633 = vmatpush.msra.mxu0 %v722_v5  ;;  %1521 = vmatpush.msra.mxu3 %v705_v42  ;;  %v2874_v5 = vsel %vm401_vm1, %v423_v58, %v425_v48 }
  0x6d   : > { %787 = vmatmul.f32.gmra.mxu1 %v2682_v60  ;;  %811 = vmatmul.f32.gmra.mxu2 %v2685_v61 }
  0x6e   : > { %1634 = vmatpush.msra.mxu0 %v721_v22  ;;  %1522 = vmatpush.msra.mxu3 %v704_v28  ;;  %v430_v22 = vrot.slane %v2821_v34, 4  ;;  %v670_v28 = vld [vmem:[%s3769_s1 + $0x2c0] sm:$0xff] }
  0x6f   : > { %835 = vmatmul.f32.gmra.mxu3 %v2689_v0  ;;  %1296 = vmatpush.msra.mxu1 %v672_v33  ;;  %v2924_v33 = vld [vmem:[%s2364_s19 + $0xb8] sm:$0xf] }
  0x70   : > { %1635 = vmatpush.msra.mxu0 %v720_v41  ;;  %1523 = vmatpush.msra.mxu3 %v703_v50  ;;  %v432_v41 = vrot.slane %v2562_v14, 4 }
  0x73   : > { %763 = vmatmul.f32.gmra.mxu0 %v2702_v7 }
  0x75   : > { %855 = vmatmul.f32.vlgmr.msrb.gmra.mxu1 %v291_v8  ;;  %968 = vmatmul.f32.vlgmr.msrb.gmra.mxu2 %v404_v9  ;;  %v2763_v8 = vsel %vm401_vm1, %v412_v3, %v413_v4  ;;  %v309_v9 = vrot.slane %v2370_v16, 2 }
  0x77   : > { %1081 = vmatmul.f32.vlgmr.msrb.gmra.mxu3 %v2599_v29  ;;  %v310_v29 = vrot.slane %v2412_v30, 2 }
  0x79   : > { %v2777_v11 = vsel %vm288_vm0, %v309_v9, %v310_v29  ;;  %v427_v9 = vrot.slane %v2461_v46, 4 }
  0x7b   : > { %1194 = vmatmul.f32.vlgmr.msrb.gmra.mxu0 %v301_v21 }
  0x7d   : > { %858 = vmatmul.f32.gmra.mxu1 %v293_v23  ;;  %971 = vmatmul.f32.gmra.mxu2 %v406_v24  ;;  %v2798_v23 = vsel %vm288_vm0, %v310_v29, %v312_v19  ;;  %v428_v29 = vrot.slane %v2510_v62, 4 }
  0x7f   : > { %1084 = vmatmul.f32.gmra.mxu3 %v2648_v49  ;;  %v689_v49 = vld [vmem:[%s3769_s1 + $0x358] sm:$0xff] }
  0x80   : > { %1408 = vmatpush.msra.mxu2 %v689_v49  ;;  %v719_v49 = vld [vmem:[%s3769_s1 + $0x448] sm:$0xff] }
  0x81   : > { %1636 = vmatpush.msra.mxu0 %v719_v49  ;;  %v435_v49 = vrot.slane %v2867_v1, 4 }
  0x82   : > { %1409 = vmatpush.msra.mxu2 %v688_v25 }
  0x83   : > { %1197 = vmatmul.f32.gmra.mxu0 %v303_v37 }
  0x84   : > { %1410 = vmatpush.msra.mxu2 %v687_v45 }
  0x85   : > { %861 = vmatmul.f32.gmra.mxu1 %v296_v38  ;;  %974 = vmatmul.f32.gmra.mxu2 %v409_v40  ;;  %v317_v38 = vrot.slane %v2821_v34, 2  ;;  %v422_v40 = vrot.slane %v2370_v16, 4 }
  0x87   : > { %1087 = vmatmul.f32.gmra.mxu3 %v2679_v59  ;;  %v314_v59 = vrot.slane %v2461_v46, 2  ;;  %v2841_v44 = vsel %vm401_vm1, %v422_v40, %v423_v58  ;;  %v2931_v40 = vsel %vm401_vm1, %v428_v29, %v430_v22  ;;  %v327_v58 = vrot.slane %v2924_v33, 2 }
  0x8b   : > { %1200 = vmatmul.f32.gmra.mxu0 %v306_v53 }
  0x8d   : > { %864 = vmatmul.f32.gmra.mxu1 %v298_v56  ;;  %977 = vmatmul.f32.gmra.mxu2 %v411_v57  ;;  %v671_v57 = vld [vmem:[%s3769_s1 + $0x2c8] sm:$0xff] }
  0x8e   : > { %1297 = vmatpush.msra.mxu1 %v671_v57 }
  0x8f   : > { %1090 = vmatmul.f32.gmra.mxu3 %v2702_v7 }
  0x90   : > { %1298 = vmatpush.msra.mxu1 %v670_v28 }
  0x93   : > { %1203 = vmatmul.f32.gmra.mxu0 %v308_v6 }
  0x95   : > { %867 = vmatmul.f32.gmra.mxu1 %v301_v21  ;;  %980 = vmatmul.f32.gmra.mxu2 %v2763_v8  ;;  %v418_v21 = vrot.slane %v2702_v7, 4  ;;  %v315_v7 = vrot.slane %v2510_v62, 2 }
  0x97   : > { %1093 = vmatmul.f32.gmra.mxu3 %v2370_v16  ;;  %v2801_v24 = vsel %vm401_vm1, %v417_v20, %v418_v21  ;;  %v2815_v32 = vsel %vm288_vm0, %v314_v59, %v315_v7  ;;  %v2836_v10 = vsel %vm288_vm0, %v315_v7, %v317_v38  ;;  %v319_v16 = vrot.slane %v2562_v14, 2  ;;  %v702_v59 = vld [vmem:[%s3769_s1 + $0x3c0] sm:$0xff] }
  0x98   : > { %v325_v20 = vrot.slane %v2682_v60, 2  ;;  %1524 = vmatpush.msra.mxu3 %v702_v59  ;;  %v2978_v59 = vld [vmem:[%s2364_s19 + $0xd0] sm:$0xf] }
  0x9a   : > { %v2948_v50 = vsel %vm288_vm0, %v325_v20, %v327_v58 }
  0x9b   : > { %1206 = vmatmul.f32.gmra.mxu0 %v2777_v11  ;;  %3815 = vst [vmem:[#allocation13_spill] sm:$0xff] %v2948_v50 }
  0x9d   : > { %870 = vmatmul.f32.gmra.mxu1 %v303_v37  ;;  %983 = vmatmul.f32.gmra.mxu2 %v2786_v18  ;;  %v2824_v37 = vsel %vm401_vm1, %v418_v21, %v420_v27  ;;  %v686_v21 = vld [vmem:[%s3769_s1 + $0x340] sm:$0xff] }
  0x9e   : > { %1411 = vmatpush.msra.mxu2 %v686_v21 }
  0x9f   : > { %1096 = vmatmul.f32.gmra.mxu3 %v2412_v30  ;;  %v320_v30 = vrot.slane %v2611_v35, 2 }
  0xa1   : > { %v2861_v56 = vsel %vm288_vm0, %v319_v16, %v320_v30  ;;  %v433_v16 = vrot.slane %v2611_v35, 4 }
  0xa3   : > { %1209 = vmatmul.f32.gmra.mxu0 %v2798_v23 }
  0xa5   : > { %873 = vmatmul.f32.gmra.mxu1 %v306_v53  ;;  %986 = vmatmul.f32.gmra.mxu2 %v2801_v24 }
  0xa7   : > { %1099 = vmatmul.f32.gmra.mxu3 %v2461_v46  ;;  %v2898_v46 = vsel %vm401_vm1, %v427_v9, %v428_v29  ;;  %v330_v9 = vrot.slane %v2415_v31, 2  ;;  %v685_v29 = vld [vmem:[%s3769_s1 + $0x338] sm:$0xff] }
  0xa8   : > { %1412 = vmatpush.msra.mxu2 %v685_v29  ;;  %v438_v29 = vrot.slane %v2682_v60, 4 }
  0xab   : > { %1212 = vmatmul.f32.gmra.mxu0 %v2815_v32 }
  0xad   : > { %876 = vmatmul.f32.gmra.mxu1 %v308_v6  ;;  %989 = vmatmul.f32.gmra.mxu2 %v2824_v37  ;;  %v322_v6 = vrot.slane %v2867_v1, 2  ;;  %v669_v1 = vld [vmem:[%s3769_s1 + $0x2b8] sm:$0xff] }
  0xae   : > { %1299 = vmatpush.msra.mxu1 %v669_v1 }
  0xaf   : > { %1102 = vmatmul.f32.gmra.mxu3 %v2510_v62  ;;  %v2891_v12 = vsel %vm288_vm0, %v320_v30, %v322_v6  ;;  %v324_v62 = vrot.slane %v2654_v51, 2  ;;  %v718_v30 = vld [vmem:[%s3769_s1 + $0x440] sm:$0xff] }
  0xb0   : > { %3811 = vst [vmem:[#allocation9_spill] sm:$0xff] %v2891_v12  ;;  %1637 = vmatpush.msra.mxu0 %v718_v30  ;;  %v332_v30 = vrot.slane %v2978_v59, 2 }
  0xb1   : > { %v2918_v27 = vsel %vm288_vm0, %v324_v62, %v325_v20  ;;  %v701_v62 = vld [vmem:[%s3769_s1 + $0x3b8] sm:$0xff] }
  0xb2   : > { %v2838_v43 = vpop.f32.mrf.mxu1  ;;  %3813 = vst [vmem:[#allocation11_spill] sm:$0xff] %v2918_v27  ;;  %1525 = vmatpush.msra.mxu3 %v701_v62  ;;  %v3005_v1 = vsel %vm288_vm0, %v330_v9, %v332_v30  ;;  %v440_v30 = vrot.slane %v2924_v33, 4  ;;  %v668_v33 = vld [vmem:[%s3769_s1 + $0x2b0] sm:$0xff] }
  0xb3   : > { %1215 = vmatmul.f32.gmra.mxu0 %v2836_v10  ;;  %1300 = vmatpush.msra.mxu1 %v668_v33 }
  0xb5   : > { %879 = vmatmul.f32.gmra.mxu1 %v2777_v11  ;;  %992 = vmatmul.f32.gmra.mxu2 %v2841_v44 }
  0xb7   : > { %1105 = vmatmul.f32.gmra.mxu3 %v2562_v14  ;;  %v2955_v14 = vsel %vm401_vm1, %v432_v41, %v433_v16  ;;  %v2988_v41 = vsel %vm401_vm1, %v433_v16, %v435_v49  ;;  %v717_v16 = vld [vmem:[%s3769_s1 + $0x438] sm:$0xff] }
  0xb8   : > { %v2856_v53 = vpop.f32.mrf.mxu2  ;;  %v2858_v55 = vpop.f32.mrf.mxu0  ;;  %3817 = vst [vmem:[#allocation15_spill] sm:$0xff] %v2955_v14  ;;  %1638 = vmatpush.msra.mxu0 %v717_v16 }
  0xb9   : > { %3820 = vst [vmem:[#allocation18_spill] sm:$0xff] %v2988_v41 }
  0xba   : > { %v2869_v3 = vpop.f32.mrf.mxu1  ;;  %v2871_v4 = vpop.f32.mrf.mxu3 }
  0xbb   : > { %3810 = vst [vmem:[#allocation8_spill] sm:$0xff] %v2871_v4  ;;  %1218 = vmatmul.f32.gmra.mxu0 %v2861_v56  ;;  %v3035_v4 = vld [vmem:[%s2364_s19 + $0xe8] sm:$0xf] }
  0xbd   : > { %882 = vmatmul.f32.gmra.mxu1 %v2798_v23  ;;  %995 = vmatmul.f32.gmra.mxu2 %v2874_v5 }
  0xbf   : > { %1108 = vmatmul.f32.gmra.mxu3 %v2611_v35  ;;  %v329_v35 = vrot.slane %v2373_v17, 2 }
  0xc0   : > { %v2886_v26 = vpop.f32.mrf.mxu2  ;;  %v2888_v42 = vpop.f32.mrf.mxu0 }
  0xc1   : > { %v2975_v22 = vsel %vm288_vm0, %v329_v35, %v330_v9  ;;  %v437_v35 = vrot.slane %v2654_v51, 4  ;;  %v684_v9 = vld [vmem:[%s3769_s1 + $0x330] sm:$0xff] }
  0xc2   : > { %v2893_v13 = vpop.f32.mrf.mxu1  ;;  %v2895_v19 = vpop.f32.mrf.mxu3  ;;  %3818 = vst [vmem:[#allocation16_spill] sm:$0xff] %v2975_v22  ;;  %1413 = vmatpush.msra.mxu2 %v684_v9 }
  0xc3   : > { %3812 = vst [vmem:[#allocation10_spill] sm:$0xff] %v2895_v19  ;;  %1221 = vmatmul.f32.gmra.mxu0 %v2891_v12 }
  0xc5   : > { %885 = vmatmul.f32.gmra.mxu1 %v2815_v32  ;;  %998 = vmatmul.f32.gmra.mxu2 %v2898_v46 }
  0xc7   : > { %1111 = vmatmul.f32.gmra.mxu3 %v2654_v51  ;;  %v3012_v51 = vsel %vm401_vm1, %v437_v35, %v438_v29  ;;  %v700_v35 = vld [vmem:[%s3769_s1 + $0x3b0] sm:$0xff] }
  0xc8   : > { %v2913_v7 = vpop.f32.mrf.mxu2  ;;  %v2915_v25 = vpop.f32.mrf.mxu0  ;;  %3823 = vst [vmem:[#allocation21_spill] sm:$0xff] %v3012_v51  ;;  %1526 = vmatpush.msra.mxu3 %v700_v35  ;;  %v442_v35 = vrot.slane %v2373_v17, 4 }
  0xca   : > { %v2926_v34 = vpop.f32.mrf.mxu1  ;;  %v2928_v38 = vpop.f32.mrf.mxu3 }
  0xcb   : > { %3814 = vst [vmem:[#allocation12_spill] sm:$0xff] %v2928_v38  ;;  %1224 = vmatmul.f32.gmra.mxu0 %v2918_v27  ;;  %v335_v38 = vrot.slane %v2513_v63, 2 }
  0xcd   : > { %888 = vmatmul.f32.gmra.mxu1 %v2836_v10  ;;  %1001 = vmatmul.f32.gmra.mxu2 %v2931_v40 }
  0xcf   : > { %1114 = vmatmul.f32.gmra.mxu3 %v2682_v60  ;;  %v334_v60 = vrot.slane %v2464_v47, 2 }
  0xd0   : > { %v2943_v45 = vpop.f32.mrf.mxu2  ;;  %v2945_v48 = vpop.f32.mrf.mxu0 }
  0xd1   : > { %v3032_v19 = vsel %vm288_vm0, %v334_v60, %v335_v38  ;;  %v337_v60 = vrot.slane %v3035_v4, 2 }
  0xd2   : > { %v2950_v57 = vpop.f32.mrf.mxu1  ;;  %v2952_v6 = vpop.f32.mrf.mxu3 }
  0xd3   : > { %3816 = vst [vmem:[#allocation14_spill] sm:$0xff] %v2952_v6  ;;  %1227 = vmatmul.f32.gmra.mxu0 %v2948_v50 }
  0xd5   : > { %891 = vmatmul.f32.gmra.mxu1 %v2861_v56  ;;  %1004 = vmatmul.f32.gmra.mxu2 %v2955_v14 }
  0xd7   : > { %1117 = vmatmul.f32.gmra.mxu3 %v2373_v17 }
  0xd8   : > { %v2970_v20 = vpop.f32.mrf.mxu2  ;;  %v2972_v21 = vpop.f32.mrf.mxu0 }
  0xda   : > { %v2983_v28 = vpop.f32.mrf.mxu1  ;;  %v2985_v58 = vpop.f32.mrf.mxu3 }
  0xdb   : > { %3819 = vst [vmem:[#allocation17_spill] sm:$0xff] %v2985_v58  ;;  %1230 = vmatmul.f32.gmra.mxu0 %v2975_v22 }
  0xdd   : > { %894 = vmatmul.f32.gmra.mxu1 %v2891_v12  ;;  %1007 = vmatmul.f32.gmra.mxu2 %v2988_v41  ;;  %v340_v41 = vrot.slane %v2614_v36, 2  ;;  %v3087_v12 = vld [vmem:[%s2364_s19 + $0x100] sm:$0xf] }
  0xdf   : > { %1120 = vmatmul.f32.gmra.mxu3 %v2415_v31 }
  0xe0   : > { %v3000_v49 = vpop.f32.mrf.mxu2  ;;  %v3002_v62 = vpop.f32.mrf.mxu0 }
  0xe1   : > { %3821 = vst [vmem:[#allocation19_spill] sm:$0xff] %v3000_v49 }
  0xe2   : > { %v3007_v58 = vpop.f32.mrf.mxu1  ;;  %v3009_v6 = vpop.f32.mrf.mxu3 }
  0xe3   : > { %3822 = vst [vmem:[#allocation20_spill] sm:$0xff] %v3009_v6  ;;  %1233 = vmatmul.f32.gmra.mxu0 %v3005_v1 }
  0xe5   : > { %897 = vmatmul.f32.gmra.mxu1 %v2918_v27  ;;  %1010 = vmatmul.f32.gmra.mxu2 %v3012_v51  ;;  %v3045_v27 = vsel %vm401_vm1, %v438_v29, %v440_v30  ;;  %v716_v29 = vld [vmem:[%s3769_s1 + $0x430] sm:$0xff] }
  0xe6   : > { %3826 = vst [vmem:[#allocation24_spill] sm:$0xff] %v3045_v27  ;;  %1639 = vmatpush.msra.mxu0 %v716_v29  ;;  %v699_v29 = vld [vmem:[%s3769_s1 + $0x3a8] sm:$0xff] }
  0xe7   : > { %1123 = vmatmul.f32.gmra.mxu3 %v2464_v47 }
  0xe8   : > { %v3027_v16 = vpop.f32.mrf.mxu2  ;;  %v3029_v6 = vpop.f32.mrf.mxu0  ;;  %1527 = vmatpush.msra.mxu3 %v699_v29 }
  0xe9   : > { %3824 = vst [vmem:[#allocation22_spill] sm:$0xff] %v3027_v16  ;;  %v443_v16 = vrot.slane %v2415_v31, 4  ;;  %v339_v31 = vrot.slane %v2565_v15, 2 }
  0xea   : > { %v3040_v9 = vpop.f32.mrf.mxu1  ;;  %v3042_v51 = vpop.f32.mrf.mxu3 }
  0xeb   : > { %3825 = vst [vmem:[#allocation23_spill] sm:$0xff] %v3042_v51  ;;  %1236 = vmatmul.f32.gmra.mxu0 %v3032_v19  ;;  %v3062_v51 = vsel %vm288_vm0, %v335_v38, %v337_v60  ;;  %v3067_v17 = vsel %vm401_vm1, %v442_v35, %v443_v16  ;;  %v683_v38 = vld [vmem:[%s3769_s1 + $0x328] sm:$0xff]  ;;  %v445_v60 = vrot.slane %v2978_v59, 4 }
  0xec   : > { %3829 = vst [vmem:[#allocation27_spill] sm:$0xff] %v3067_v17  ;;  %1414 = vmatpush.msra.mxu2 %v683_v38  ;;  %v667_v59 = vld [vmem:[%s3769_s1 + $0x2a8] sm:$0xff] }
  0xed   : > { %900 = vmatmul.f32.gmra.mxu1 %v2948_v50  ;;  %1013 = vmatmul.f32.gmra.mxu2 %v3045_v27  ;;  %v3093_v38 = vsel %vm401_vm1, %v443_v16, %v445_v60  ;;  %v715_v16 = vld [vmem:[%s3769_s1 + $0x428] sm:$0xff] }
  0xee   : > { %1301 = vmatpush.msra.mxu1 %v667_v59  ;;  %1640 = vmatpush.msra.mxu0 %v715_v16 }
  0xef   : > { %1126 = vmatmul.f32.gmra.mxu3 %v2513_v63 }
  0xf0   : > { %v3057_v30 = vpop.f32.mrf.mxu2  ;;  %v3059_v33 = vpop.f32.mrf.mxu0 }
  0xf1   : > { %3827 = vst [vmem:[#allocation25_spill] sm:$0xff] %v3057_v30 }
  0xf2   : > { %v3064_v50 = vpop.f32.mrf.mxu3  ;;  %v856_v27 = vpop.f32.mrf.mxu1 }
  0xf3   : > { %3828 = vst [vmem:[#allocation26_spill] sm:$0xff] %v3064_v50  ;;  %1239 = vmatmul.f32.gmra.mxu0 %v3062_v51  ;;  %v857_v35 = vadd.f32 %v856_v27, %v2858_v55 }
  0xf5   : > { %903 = vmatmul.f32.gmra.mxu1 %v2975_v22  ;;  %1016 = vmatmul.f32.gmra.mxu2 %v3067_v17  ;;  %v3084_v22 = vsel %vm288_vm0, %v339_v31, %v340_v41  ;;  %v342_v31 = vrot.slane %v3087_v12, 2 }
  0xf6   : > { %3830 = vst [vmem:[#allocation28_spill] sm:$0xff] %v3084_v22 }
  0xf7   : > { %1129 = vmatmul.f32.gmra.mxu3 %v2565_v15 }
  0xf8   : > { %v969_v50 = vpop.f32.mrf.mxu2  ;;  %v1195_v30 = vpop.f32.mrf.mxu0 }
  0xf9   : > { %v970_v17 = vadd.f32 %v969_v50, %v857_v35  ;;  %v447_v50 = vrot.slane %v2464_v47, 4  ;;  %v448_v35 = vrot.slane %v2513_v63, 4 }
  0xfa   : > { %v859_v55 = vpop.f32.mrf.mxu1  ;;  %v1082_v27 = vpop.f32.mrf.mxu3 }
  0xfb   : > { %v1083_v49 = vadd.f32 %v1082_v27, %v970_v17  ;;  %1242 = vmatmul.f32.gmra.mxu0 %v3084_v22  ;;  %v860_v29 = vadd.f32 %v859_v55, %v2888_v42  ;;  %v3112_v47 = vsel %vm401_vm1, %v447_v50, %v448_v35  ;;  %v344_v42 = vrot.slane %v2657_v52, 2 }
  0xfc   : > { %v345_v55 = vrot.slane %v2685_v61, 2 }
  0xfd   : > { %v3097_v14 = vadd.f32 %v1195_v30, %v1083_v49  ;;  %906 = vmatmul.f32.gmra.mxu1 %v3005_v1  ;;  %1019 = vmatmul.f32.gmra.mxu2 %v3093_v38  ;;  %v3109_v49 = vsel %vm288_vm0, %v340_v41, %v342_v31  ;;  %v682_v41 = vld [vmem:[%s3769_s1 + $0x320] sm:$0xff]  ;;  %v450_v31 = vrot.slane %v3035_v4, 4 }
  0xfe   : > { %1415 = vmatpush.msra.mxu2 %v682_v41  ;;  %v666_v4 = vld [vmem:[%s3769_s1 + $0x2a0] sm:$0xff] }
  0xff   : > { %3831 = vst [vmem:[#allocation29_spill] sm:$0xff] %v3097_v14  ;;  %1132 = vmatmul.f32.gmra.mxu3 %v2614_v36  ;;  %1302 = vmatpush.msra.mxu1 %v666_v4 }
 0x100   : > { %v972_v17 = vpop.f32.mrf.mxu2  ;;  %v1198_v60 = vpop.f32.mrf.mxu0 }
 0x101   : > { %v973_v30 = vadd.f32 %v972_v17, %v860_v29  ;;  %v698_v29 = vld [vmem:[%s3769_s1 + $0x3a0] sm:$0xff] }
 0x102   : > { %v862_v59 = vpop.f32.mrf.mxu1  ;;  %v1085_v27 = vpop.f32.mrf.mxu3  ;;  %1528 = vmatpush.msra.mxu3 %v698_v29  ;;  %v453_v29 = vrot.slane %v2614_v36, 4 }
 0x103   : > { %v1086_v63 = vadd.f32 %v1085_v27, %v973_v30  ;;  %1245 = vmatmul.f32.gmra.mxu0 %v3109_v49  ;;  %v863_v50 = vadd.f32 %v862_v59, %v2915_v25  ;;  %v3134_v27 = vld [vmem:[%s2364_s19 + $0x118] sm:$0xf] }
 0x105   : > { %v3117_v14 = vadd.f32 %v1198_v60, %v1086_v63  ;;  %909 = vmatmul.f32.gmra.mxu1 %v3032_v19  ;;  %1022 = vmatmul.f32.gmra.mxu2 %v3112_v47  ;;  %v3131_v60 = vsel %vm288_vm0, %v344_v42, %v345_v55  ;;  %v3140_v63 = vsel %vm401_vm1, %v448_v35, %v450_v31  ;;  %v347_v42 = vrot.slane %v3134_v27, 2  ;;  %v714_v31 = vld [vmem:[%s3769_s1 + $0x420] sm:$0xff] }
 0x106   : > { %1641 = vmatpush.msra.mxu0 %v714_v31 }
 0x107   : > { %3832 = vst [vmem:[#allocation30_spill] sm:$0xff] %v3117_v14  ;;  %1135 = vmatmul.f32.gmra.mxu3 %v2657_v52 }
 0x108   : > { %v975_v16 = vpop.f32.mrf.mxu2  ;;  %v1201_v17 = vpop.f32.mrf.mxu0 }
 0x109   : > { %v976_v30 = vadd.f32 %v975_v16, %v863_v50  ;;  %v452_v50 = vrot.slane %v2565_v15, 4 }
 0x10a   : > { %v865_v25 = vpop.f32.mrf.mxu1  ;;  %v1088_v59 = vpop.f32.mrf.mxu3 }
 0x10b   : > { %v1089_v41 = vadd.f32 %v1088_v59, %v976_v30  ;;  %1248 = vmatmul.f32.gmra.mxu0 %v3131_v60  ;;  %v866_v35 = vadd.f32 %v865_v25, %v2945_v48  ;;  %v3156_v30 = vsel %vm288_vm0, %v345_v55, %v347_v42  ;;  %v3159_v36 = vsel %vm401_vm1, %v452_v50, %v453_v29  ;;  %v3163_v48 = vld [vmem:[%s2364_s19 + $0x120] sm:$0xff]  ;;  %v681_v50 = vld [vmem:[%s3769_s1 + $0x318] sm:$0xff] }
 0x10c   : > { %3834 = vst [vmem:[#allocation32_spill] sm:$0xff] %v3159_v36  ;;  %v349_v25 = vrot.slane %v3163_v48, 2  ;;  %1416 = vmatpush.msra.mxu2 %v681_v50 }
 0x10d   : > { %v3144_v14 = vadd.f32 %v1201_v17, %v1089_v41  ;;  %912 = vmatmul.f32.gmra.mxu1 %v3062_v51  ;;  %1025 = vmatmul.f32.gmra.mxu2 %v3140_v63  ;;  %3835 = vst [vmem:[#allocation33_spill] sm:$0xff] %v3163_v48 }
 0x10f   : > { %3833 = vst [vmem:[#allocation31_spill] sm:$0xff] %v3144_v14  ;;  %1138 = vmatmul.f32.gmra.mxu3 %v2685_v61  ;;  %v3167_v14 = vld [vmem:[%s2364_s19 + $0x128] sm:$0xff] }
 0x110   : > { %v978_v16 = vpop.f32.mrf.mxu2  ;;  %v1204_v17 = vpop.f32.mrf.mxu0  ;;  %3836 = vst [vmem:[#allocation34_spill] sm:$0xff] %v3167_v14  ;;  %v350_v55 = vrot.slane %v3167_v14, 2 }
 0x111   : > { %v979_v4 = vadd.f32 %v978_v16, %v866_v35  ;;  %v455_v35 = vrot.slane %v3087_v12, 4  ;;  %v697_v16 = vld [vmem:[%s3769_s1 + $0x398] sm:$0xff] }
 0x112   : > { %v868_v59 = vpop.f32.mrf.mxu1  ;;  %v1091_v15 = vpop.f32.mrf.mxu3  ;;  %1529 = vmatpush.msra.mxu3 %v697_v16  ;;  %v665_v12 = vld [vmem:[%s3769_s1 + $0x298] sm:$0xff]  ;;  %v458_v16 = vrot.slane %v2685_v61, 4 }
 0x113   : > { %v1092_v41 = vadd.f32 %v1091_v15, %v979_v4  ;;  %1251 = vmatmul.f32.gmra.mxu0 %v3156_v30  ;;  %v869_v31 = vadd.f32 %v868_v59, %v2972_v21  ;;  %v3184_v15 = vsel %vm288_vm0, %v349_v25, %v350_v55  ;;  %v3193_v50 = vsel %vm401_vm1, %v453_v29, %v455_v35  ;;  %v713_v35 = vld [vmem:[%s3769_s1 + $0x418] sm:$0xff] }
 0x114   : > { %3838 = vst [vmem:[#allocation36_spill] sm:$0xff] %v3193_v50  ;;  %1303 = vmatpush.msra.mxu1 %v665_v12  ;;  %1642 = vmatpush.msra.mxu0 %v713_v35 }
 0x115   : > { %v3170_v42 = vadd.f32 %v1204_v17, %v1092_v41  ;;  %915 = vmatmul.f32.gmra.mxu1 %v3084_v22  ;;  %1028 = vmatmul.f32.gmra.mxu2 %v3159_v36 }
 0x117   : > { %3837 = vst [vmem:[#allocation35_spill] sm:$0xff] %v3170_v42  ;;  %1141 = vmatmul.f32.gmra.mxu3 %v3163_v48  ;;  %v3187_v42 = vld [vmem:[%s2364_s19 + $0x130] sm:$0xf] }
 0x118   : > { %v981_v17 = vpop.f32.mrf.mxu2  ;;  %v1207_v4 = vpop.f32.mrf.mxu0  ;;  %v352_v25 = vrot.slane %v3187_v42, 2 }
 0x119   : > { %v982_v41 = vadd.f32 %v981_v17, %v869_v31  ;;  %v457_v31 = vrot.slane %v2657_v52, 4 }
 0x11a   : > { %v871_v21 = vpop.f32.mrf.mxu1  ;;  %v1094_v59 = vpop.f32.mrf.mxu3 }
 0x11b   : > { %v1095_v36 = vadd.f32 %v1094_v59, %v982_v41  ;;  %1254 = vmatmul.f32.gmra.mxu0 %v3184_v15  ;;  %v872_v29 = vadd.f32 %v871_v21, %v3002_v62  ;;  %v3212_v52 = vsel %vm401_vm1, %v457_v31, %v458_v16  ;;  %v3216_v62 = vld [vmem:[%s2364_s19 + $0x138] sm:$0xff] }
 0x11c   : > { %3840 = vst [vmem:[#allocation38_spill] sm:$0xff] %v3216_v62  ;;  %v354_v21 = vrot.slane %v3216_v62, 2 }
 0x11d   : > { %v3197_v22 = vadd.f32 %v1207_v4, %v1095_v36  ;;  %918 = vmatmul.f32.gmra.mxu1 %v3109_v49  ;;  %1031 = vmatmul.f32.gmra.mxu2 %v3193_v50  ;;  %v3209_v4 = vsel %vm288_vm0, %v350_v55, %v352_v25  ;;  %v680_v55 = vld [vmem:[%s3769_s1 + $0x310] sm:$0xff]  ;;  %v460_v25 = vrot.slane %v3134_v27, 4 }
 0x11e   : > { %1417 = vmatpush.msra.mxu2 %v680_v55 }
 0x11f   : > { %3839 = vst [vmem:[#allocation37_spill] sm:$0xff] %v3197_v22  ;;  %1144 = vmatmul.f32.gmra.mxu3 %v3167_v14  ;;  %v355_v22 = vrot.slane %v2523_v2, 2  ;;  %v696_v2 = vld [vmem:[%s3769_s1 + $0x390] sm:$0xff] }
 0x120   : > { %v984_v17 = vpop.f32.mrf.mxu2  ;;  %v1210_v36 = vpop.f32.mrf.mxu0  ;;  %1530 = vmatpush.msra.mxu3 %v696_v2  ;;  %v463_v2 = vrot.slane %v3167_v14, 4 }
 0x121   : > { %v985_v41 = vadd.f32 %v984_v17, %v872_v29  ;;  %v3234_v17 = vsel %vm288_vm0, %v354_v21, %v355_v22 }
 0x122   : > { %v874_v12 = vpop.f32.mrf.mxu1  ;;  %v1097_v59 = vpop.f32.mrf.mxu3 }
 0x123   : > { %v1098_v61 = vadd.f32 %v1097_v59, %v985_v41  ;;  %1257 = vmatmul.f32.gmra.mxu0 %v3209_v4  ;;  %v875_v31 = vadd.f32 %v874_v12, %v3029_v6  ;;  %v3237_v41 = vld [vmem:[%s2364_s19 + $0x148] sm:$0xf]  ;;  %v664_v6 = vld [vmem:[%s3769_s1 + $0x290] sm:$0xff]  ;;  %v3243_v59 = vsel %vm401_vm1, %v458_v16, %v460_v25  ;;  %v3255_v25 = vld [vmem:[%s2364_s19 + $0x140] sm:$0xff] }
 0x124   : > { %3842 = vst [vmem:[#allocation40_spill] sm:$0xff] %v3243_v59  ;;  %1304 = vmatpush.msra.mxu1 %v664_v6  ;;  %v357_v21 = vrot.slane %v3237_v41, 2 }
 0x125   : > { %v3220_v50 = vadd.f32 %v1210_v36, %v1098_v61  ;;  %921 = vmatmul.f32.gmra.mxu1 %v3131_v60  ;;  %1034 = vmatmul.f32.gmra.mxu2 %v3212_v52  ;;  %3844 = vst [vmem:[#allocation42_spill] sm:$0xff] %v3255_v25 }
 0x126   : > { %v3262_v6 = vsel %vm288_vm0, %v355_v22, %v357_v21  ;;  %v679_v22 = vld [vmem:[%s3769_s1 + $0x308] sm:$0xff]  ;;  %v465_v21 = vrot.slane %v3187_v42, 4 }
 0x127   : > { %3841 = vst [vmem:[#allocation39_spill] sm:$0xff] %v3220_v50  ;;  %1147 = vmatmul.f32.gmra.mxu3 %v3216_v62  ;;  %1418 = vmatpush.msra.mxu2 %v679_v22 }
 0x128   : > { %v987_v29 = vpop.f32.mrf.mxu2  ;;  %v1213_v35 = vpop.f32.mrf.mxu0 }
 0x129   : > { %v988_v36 = vadd.f32 %v987_v29, %v875_v31  ;;  %v462_v31 = vrot.slane %v3163_v48, 4  ;;  %v712_v29 = vld [vmem:[%s3769_s1 + $0x410] sm:$0xff]  ;;  %v360_v48 = vrot.slane %v2624_v39, 2  ;;  %v695_v39 = vld [vmem:[%s3769_s1 + $0x388] sm:$0xff] }
 0x12a   : > { %v877_v27 = vpop.f32.mrf.mxu1  ;;  %v1100_v12 = vpop.f32.mrf.mxu3  ;;  %1643 = vmatpush.msra.mxu0 %v712_v29  ;;  %1531 = vmatpush.msra.mxu3 %v695_v39  ;;  %v468_v39 = vrot.slane %v3255_v25, 4 }
 0x12b   : > { %v1101_v61 = vadd.f32 %v1100_v12, %v988_v36  ;;  %1260 = vmatmul.f32.gmra.mxu0 %v3234_v17  ;;  %v878_v16 = vadd.f32 %v877_v27, %v3059_v33  ;;  %v3265_v50 = vsel %vm401_vm1, %v462_v31, %v463_v2  ;;  %v3269_v27 = vld [vmem:[%s2364_s19 + $0x150] sm:$0xff] }
 0x12c   : > { %3845 = vst [vmem:[#allocation43_spill] sm:$0xff] %v3269_v27  ;;  %v359_v14 = vrot.slane %v3269_v27, 2 }
 0x12d   : > { %v3247_v55 = vadd.f32 %v1213_v35, %v1101_v61  ;;  %924 = vmatmul.f32.gmra.mxu1 %v3156_v30  ;;  %1037 = vmatmul.f32.gmra.mxu2 %v3243_v59 }
 0x12e   : > { %v3287_v29 = vsel %vm288_vm0, %v359_v14, %v360_v48 }
 0x12f   : > { %3843 = vst [vmem:[#allocation41_spill] sm:$0xff] %v3247_v55  ;;  %1150 = vmatmul.f32.gmra.mxu3 %v3255_v25  ;;  %v365_v25 = vrot.slane %v2689_v0, 2 }
 0x130   : > { %v990_v35 = vpop.f32.mrf.mxu2  ;;  %v1216_v36 = vpop.f32.mrf.mxu0 }
 0x131   : > { %v991_v12 = vadd.f32 %v990_v35, %v878_v16 }
 0x132   : > { %v880_v61 = vpop.f32.mrf.mxu1  ;;  %v1103_v55 = vpop.f32.mrf.mxu3 }
 0x133   : > { %v1104_v33 = vadd.f32 %v1103_v55, %v991_v12  ;;  %1263 = vmatmul.f32.gmra.mxu0 %v3262_v6  ;;  %v881_v55 = vadd.f32 %v880_v61, %v2838_v43  ;;  %v663_v43 = vld [vmem:[%s3769_s1 + $0x288] sm:$0xff]  ;;  %v3296_v61 = vsel %vm401_vm1, %v463_v2, %v465_v21  ;;  %v3308_v2 = vld [vmem:[%s2364_s19 + $0x158] sm:$0xff] }
 0x134   : > { %1305 = vmatpush.msra.mxu1 %v663_v43  ;;  %3848 = vst [vmem:[#allocation46_spill] sm:$0xff] %v3308_v2  ;;  %v711_v21 = vld [vmem:[%s3769_s1 + $0x408] sm:$0xff] }
 0x135   : > { %v3273_v59 = vadd.f32 %v1216_v36, %v1104_v33  ;;  %927 = vmatmul.f32.gmra.mxu1 %v3184_v15  ;;  %1040 = vmatmul.f32.gmra.mxu2 %v3265_v50  ;;  %v3290_v36 = vld [vmem:[%s2364_s19 + $0x160] sm:$0xf] }
 0x136   : > { %v362_v14 = vrot.slane %v3290_v36, 2  ;;  %1644 = vmatpush.msra.mxu0 %v711_v21 }
 0x137   : > { %3846 = vst [vmem:[#allocation44_spill] sm:$0xff] %v3273_v59  ;;  %1153 = vmatmul.f32.gmra.mxu3 %v3269_v27  ;;  %v364_v59 = vrot.slane %v2664_v54, 2  ;;  %v694_v54 = vld [vmem:[%s3769_s1 + $0x380] sm:$0xff] }
 0x138   : > { %v993_v31 = vpop.f32.mrf.mxu2  ;;  %v1219_v16 = vpop.f32.mrf.mxu0  ;;  %v3315_v43 = vsel %vm288_vm0, %v360_v48, %v362_v14  ;;  %v678_v48 = vld [vmem:[%s3769_s1 + $0x300] sm:$0xff]  ;;  %v470_v14 = vrot.slane %v3237_v41, 4  ;;  %1532 = vmatpush.msra.mxu3 %v694_v54  ;;  %v3343_v41 = vld [vmem:[%s2364_s19 + $0x178] sm:$0xf]  ;;  %v473_v54 = vrot.slane %v3308_v2, 4 }
 0x139   : > { %v994_v35 = vadd.f32 %v993_v31, %v881_v55  ;;  %v467_v55 = vrot.slane %v3216_v62, 4  ;;  %1419 = vmatpush.msra.mxu2 %v678_v48  ;;  %v3340_v21 = vsel %vm288_vm0, %v364_v59, %v365_v25  ;;  %v367_v59 = vrot.slane %v3343_v41, 2 }
 0x13a   : > { %v883_v42 = vpop.f32.mrf.mxu1  ;;  %v1106_v12 = vpop.f32.mrf.mxu3 }
 0x13b   : > { %v1107_v33 = vadd.f32 %v1106_v12, %v994_v35  ;;  %1266 = vmatmul.f32.gmra.mxu0 %v3287_v29  ;;  %v884_v31 = vadd.f32 %v883_v42, %v2869_v3  ;;  %v3318_v3 = vsel %vm401_vm1, %v467_v55, %v468_v39  ;;  %v3333_v55 = vld [vmem:[%s2364_s19 + $0x168] sm:$0xff] }
 0x13d   : > { %v3300_v22 = vadd.f32 %v1219_v16, %v1107_v33  ;;  %930 = vmatmul.f32.gmra.mxu1 %v3209_v4  ;;  %1043 = vmatmul.f32.gmra.mxu2 %v3296_v61 }
 0x13f   : > { %3847 = vst [vmem:[#allocation45_spill] sm:$0xff] %v3300_v22  ;;  %1156 = vmatmul.f32.gmra.mxu3 %v3308_v2  ;;  %v3377_v2 = vld [vmem:[%s2364_s19 + $0x180] sm:$0xff] }
 0x140   : > { %v996_v16 = vpop.f32.mrf.mxu2  ;;  %v1222_v35 = vpop.f32.mrf.mxu0 }
 0x141   : > { %v997_v12 = vadd.f32 %v996_v16, %v884_v31 }
 0x142   : > { %v886_v33 = vpop.f32.mrf.mxu1  ;;  %v1109_v22 = vpop.f32.mrf.mxu3 }
 0x143   : > { %v1110_v42 = vadd.f32 %v1109_v22, %v997_v12  ;;  %1269 = vmatmul.f32.gmra.mxu0 %v3315_v43  ;;  %v887_v22 = vadd.f32 %v886_v33, %v2893_v13  ;;  %v662_v13 = vld [vmem:[%s3769_s1 + $0x280] sm:$0xff]  ;;  %v3349_v33 = vsel %vm401_vm1, %v468_v39, %v470_v14  ;;  %v3361_v14 = vld [vmem:[%s2364_s19 + $0x170] sm:$0xff] }
 0x144   : > { %3850 = vst [vmem:[#allocation48_spill] sm:$0xff] %v3349_v33  ;;  %1306 = vmatpush.msra.mxu1 %v662_v13  ;;  %v3368_v13 = vsel %vm288_vm0, %v365_v25, %v367_v59 }
 0x145   : > { %v3323_v62 = vadd.f32 %v1222_v35, %v1110_v42  ;;  %933 = vmatmul.f32.gmra.mxu1 %v3234_v17  ;;  %1046 = vmatmul.f32.gmra.mxu2 %v3318_v3 }
 0x147   : > { %3849 = vst [vmem:[#allocation47_spill] sm:$0xff] %v3323_v62  ;;  %1159 = vmatmul.f32.gmra.mxu3 %v3333_v55 }
 0x148   : > { %v999_v0 = vpop.f32.mrf.mxu2  ;;  %v1225_v31 = vpop.f32.mrf.mxu0 }
 0x149   : > { %v1000_v16 = vadd.f32 %v999_v0, %v887_v22  ;;  %v472_v22 = vrot.slane %v3269_v27, 4  ;;  %v710_v0 = vld [vmem:[%s3769_s1 + $0x400] sm:$0xff]  ;;  %v520_v27 = vrot.slane %v3377_v2, 2 }
 0x14a   : > { %v889_v35 = vpop.f32.mrf.mxu1  ;;  %v1112_v12 = vpop.f32.mrf.mxu3  ;;  %1645 = vmatpush.msra.mxu0 %v710_v0 }
 0x14b   : > { %v1113_v42 = vadd.f32 %v1112_v12, %v1000_v16  ;;  %1272 = vmatmul.f32.gmra.mxu0 %v3340_v21  ;;  %v890_v39 = vadd.f32 %v889_v35, %v2926_v34  ;;  %v3374_v34 = vsel %vm401_vm1, %v472_v22, %v473_v54 }
 0x14c   : > { %3853 = vst [vmem:[#allocation51_spill] sm:$0xff] %v3374_v34 }
 0x14d   : > { %v3353_v48 = vadd.f32 %v1225_v31, %v1113_v42  ;;  %936 = vmatmul.f32.gmra.mxu1 %v3262_v6  ;;  %1049 = vmatmul.f32.gmra.mxu2 %v3349_v33  ;;  %v3371_v42 = vld [vmem:[%s2364_s19 + $0x188] sm:$0xff]  ;;  %v3393_v33 = vld [vmem:[%s2364_s19 + $0x190] sm:$0xf] }
 0x14e   : > { %3852 = vst [vmem:[#allocation50_spill] sm:$0xff] %v3371_v42  ;;  %v521_v25 = vrot.slane %v3371_v42, 2 }
 0x14f   : > { %3851 = vst [vmem:[#allocation49_spill] sm:$0xff] %v3353_v48  ;;  %1162 = vmatmul.f32.gmra.mxu3 %v3361_v14 }
 0x150   : > { %v1002_v31 = vpop.f32.mrf.mxu2  ;;  %v1228_v16 = vpop.f32.mrf.mxu0  ;;  %3856 = vst [vmem:[#allocation54_spill] sm:$0xff] %v3393_v33 }
 0x151   : > { %v1003_v12 = vadd.f32 %v1002_v31, %v890_v39  ;;  %v475_v39 = vrot.slane %v3290_v36, 4  ;;  %v3390_v31 = vsel %vm288_vm0, %v520_v27, %v521_v25  ;;  %v477_v27 = vrot.slane %v3333_v55, 4 }
 0x152   : > { %v892_v48 = vpop.f32.mrf.mxu1  ;;  %v1115_v62 = vpop.f32.mrf.mxu3  ;;  %3855 = vst [vmem:[#allocation53_spill] sm:$0xff] %v3390_v31 }
 0x153   : > { %v1116_v35 = vadd.f32 %v1115_v62, %v1003_v12  ;;  %1275 = vmatmul.f32.gmra.mxu0 %v3368_v13  ;;  %v893_v22 = vadd.f32 %v892_v48, %v2950_v57  ;;  %v523_v57 = vrot.slane %v3393_v33, 2  ;;  %v478_v48 = vrot.slane %v3361_v14, 4 }
 0x155   : > { %v3382_v59 = vadd.f32 %v1228_v16, %v1116_v35  ;;  %939 = vmatmul.f32.gmra.mxu1 %v3287_v29  ;;  %1052 = vmatmul.f32.gmra.mxu2 %v3374_v34 }
 0x157   : > { %3854 = vst [vmem:[#allocation52_spill] sm:$0xff] %v3382_v59  ;;  %1165 = vmatmul.f32.gmra.mxu3 %v3377_v2  ;;  %v3396_v59 = vsel %vm401_vm1, %v473_v54, %v475_v39 }
 0x158   : > { %v1005_v62 = vpop.f32.mrf.mxu2  ;;  %v1231_v0 = vpop.f32.mrf.mxu0 }
 0x159   : > { %v1006_v12 = vadd.f32 %v1005_v62, %v893_v22  ;;  %v3409_v62 = vsel %vm288_vm0, %v521_v25, %v523_v57  ;;  %v480_v57 = vrot.slane %v3343_v41, 4 }
 0x15a   : > { %v895_v16 = vpop.f32.mrf.mxu1  ;;  %v1118_v35 = vpop.f32.mrf.mxu3  ;;  %3858 = vst [vmem:[#allocation56_spill] sm:$0xff] %v3409_v62 }
 0x15b   : > { %v1119_v34 = vadd.f32 %v1118_v35, %v1006_v12  ;;  %1278 = vmatmul.f32.gmra.mxu0 %v3390_v31  ;;  %v896_v22 = vadd.f32 %v895_v16, %v2983_v28  ;;  %v3418_v31 = vld [vmem:[%s2364_s19 + $0x198] sm:$0xff] }
 0x15c   : > { %v525_v28 = vrot.slane %v3418_v31, 2 }
 0x15d   : > { %v3400_v36 = vadd.f32 %v1231_v0, %v1119_v34  ;;  %942 = vmatmul.f32.gmra.mxu1 %v3315_v43  ;;  %1055 = vmatmul.f32.gmra.mxu2 %v3396_v59  ;;  %v3412_v0 = vld [vmem:[%s2364_s19 + $0x1a0] sm:$0xff] }
 0x15e   : > { %v526_v16 = vrot.slane %v3412_v0, 2 }
 0x15f   : > { %3857 = vst [vmem:[#allocation55_spill] sm:$0xff] %v3400_v36  ;;  %1168 = vmatmul.f32.gmra.mxu3 %v3371_v42  ;;  %v3415_v36 = vsel %vm401_vm1, %v477_v27, %v478_v48 }
 0x160   : > { %v1008_v54 = vpop.f32.mrf.mxu2  ;;  %v1234_v39 = vpop.f32.mrf.mxu0 }
 0x161   : > { %v1009_v34 = vadd.f32 %v1008_v54, %v896_v22 }
 0x162   : > { %v898_v12 = vpop.f32.mrf.mxu1  ;;  %v1121_v35 = vpop.f32.mrf.mxu3 }
 0x163   : > { %v1122_v33 = vadd.f32 %v1121_v35, %v1009_v34  ;;  %1281 = vmatmul.f32.gmra.mxu0 %v3409_v62  ;;  %v899_v27 = vadd.f32 %v898_v12, %v3007_v58  ;;  %v3431_v34 = vsel %vm288_vm0, %v525_v28, %v526_v16  ;;  %v3434_v62 = vld [vmem:[%s2364_s19 + $0x1a8] sm:$0xf] }
 0x164   : > { %v528_v58 = vrot.slane %v3434_v62, 2 }
 0x165   : > { %v3423_v25 = vadd.f32 %v1234_v39, %v1122_v33  ;;  %945 = vmatmul.f32.gmra.mxu1 %v3340_v21  ;;  %1058 = vmatmul.f32.gmra.mxu2 %v3415_v36 }
 0x167   : > { %3859 = vst [vmem:[#allocation57_spill] sm:$0xff] %v3423_v25  ;;  %1171 = vmatmul.f32.gmra.mxu3 %v3418_v31  ;;  %v3437_v25 = vsel %vm401_vm1, %v478_v48, %v480_v57  ;;  %v3448_v48 = vsel %vm288_vm0, %v526_v16, %v528_v58 }
 0x168   : > { %v1011_v22 = vpop.f32.mrf.mxu2  ;;  %v1237_v54 = vpop.f32.mrf.mxu0 }
 0x169   : > { %v1012_v35 = vadd.f32 %v1011_v22, %v899_v27 }
 0x16a   : > { %v901_v33 = vpop.f32.mrf.mxu1  ;;  %v1124_v39 = vpop.f32.mrf.mxu3 }
 0x16b   : > { %v1125_v42 = vadd.f32 %v1124_v39, %v1012_v35  ;;  %1284 = vmatmul.f32.gmra.mxu0 %v3431_v34  ;;  %v902_v12 = vadd.f32 %v901_v33, %v3040_v9 }
 0x16d   : > { %v3441_v41 = vadd.f32 %v1237_v54, %v1125_v42  ;;  %948 = vmatmul.f32.gmra.mxu1 %v3368_v13  ;;  %1061 = vmatmul.f32.gmra.mxu2 %v3437_v25  ;;  %v2132_v54 = vld [vmem:[%s2364_s19 + $0x60] sm:$0xff] }
 0x16f   : > { %3860 = vst [vmem:[#allocation58_spill] sm:$0xff] %v3441_v41  ;;  %1174 = vmatmul.f32.gmra.mxu3 %v3412_v0 }
 0x170   : > { %v1014_v28 = vpop.f32.mrf.mxu2  ;;  %v1240_v27 = vpop.f32.mrf.mxu0 }
 0x171   : > { %v1015_v57 = vadd.f32 %v1014_v28, %v902_v12 }
 0x172   : > { %v904_v22 = vpop.f32.mrf.mxu1  ;;  %v1127_v35 = vpop.f32.mrf.mxu3 }
 0x173   : > { %v1128_v39 = vadd.f32 %v1127_v35, %v1015_v57  ;;  %1287 = vmatmul.f32.gmra.mxu0 %v3448_v48  ;;  %v905_v9 = vadd.f32 %v904_v22, %v2856_v53 }
 0x175   : > { %v3451_v42 = vadd.f32 %v1240_v27, %v1128_v39  ;;  %1307 = vmatmul.f32.vlgmr.msra.gmra.mxu1 %v2763_v8  ;;  %1420 = vmatmul.f32.vlgmr.msra.gmra.mxu2 %v2132_v54  ;;  %v2133_v8 = vld [vmem:[%s2364_s19 + $0x68] sm:$0xff] }
 0x177   : > { %1533 = vmatmul.f32.vlgmr.msra.gmra.mxu3 %v2777_v11 }
 0x178   : > { %v1017_v33 = vpop.f32.mrf.mxu2  ;;  %v1243_v16 = vpop.f32.mrf.mxu0 }
 0x179   : > { %v1018_v58 = vadd.f32 %v1017_v33, %v905_v9 }
 0x17a   : > { %v907_v12 = vpop.f32.mrf.mxu1  ;;  %v1130_v28 = vpop.f32.mrf.mxu3 }
 0x17b   : > { %v1131_v41 = vadd.f32 %v1130_v28, %v1018_v58  ;;  %1646 = vmatmul.f32.vlgmr.msra.gmra.mxu0 %v2841_v44  ;;  %v908_v27 = vadd.f32 %v907_v12, %v2886_v26 }
 0x17d   : > { %v3458_v57 = vadd.f32 %v1243_v16, %v1131_v41  ;;  %1310 = vmatmul.f32.gmra.mxu1 %v2786_v18  ;;  %1423 = vmatmul.f32.gmra.mxu2 %v2133_v8  ;;  %v2134_v18 = vld [vmem:[%s2364_s19 + $0x78] sm:$0xff] }
 0x17f   : > { %1536 = vmatmul.f32.gmra.mxu3 %v2798_v23 }
 0x180   : > { %v1020_v11 = vpop.f32.mrf.mxu2  ;;  %v1246_v53 = vpop.f32.mrf.mxu0 }
 0x181   : > { %v1021_v22 = vadd.f32 %v1020_v11, %v908_v27 }
 0x182   : > { %v910_v35 = vpop.f32.mrf.mxu1  ;;  %v1133_v39 = vpop.f32.mrf.mxu3 }
 0x183   : > { %v1134_v54 = vadd.f32 %v1133_v39, %v1021_v22  ;;  %1649 = vmatmul.f32.gmra.mxu0 %v2874_v5  ;;  %v911_v41 = vadd.f32 %v910_v35, %v2913_v7 }
 0x185   : > { %v3465_v9 = vadd.f32 %v1246_v53, %v1134_v54  ;;  %1313 = vmatmul.f32.gmra.mxu1 %v2801_v24  ;;  %1426 = vmatmul.f32.gmra.mxu2 %v2134_v18  ;;  %v2135_v24 = vld [vmem:[%s2364_s19 + $0x80] sm:$0xff] }
 0x187   : > { %1539 = vmatmul.f32.gmra.mxu3 %v2815_v32 }
 0x188   : > { %v1023_v23 = vpop.f32.mrf.mxu2  ;;  %v1249_v26 = vpop.f32.mrf.mxu0 }
 0x189   : > { %v1024_v33 = vadd.f32 %v1023_v23, %v911_v41 }
 0x18a   : > { %v913_v16 = vpop.f32.mrf.mxu1  ;;  %v1136_v58 = vpop.f32.mrf.mxu3 }
 0x18b   : > { %v1137_v12 = vadd.f32 %v1136_v58, %v1024_v33  ;;  %1652 = vmatmul.f32.gmra.mxu0 %v2898_v46  ;;  %v914_v8 = vadd.f32 %v913_v16, %v2943_v45  ;;  %v3862_v16 = vld [vmem:[#allocation19_spill] sm:$0xff] }
 0x18d   : > { %v3472_v28 = vadd.f32 %v1249_v26, %v1137_v12  ;;  %1316 = vmatmul.f32.gmra.mxu1 %v2824_v37  ;;  %1429 = vmatmul.f32.gmra.mxu2 %v2135_v24  ;;  %v2136_v37 = vld [vmem:[%s2364_s19 + $0x90] sm:$0xff]  ;;  %v3861_v26 = vld [vmem:[#allocation15_spill] sm:$0xff] }
 0x18f   : > { %1542 = vmatmul.f32.gmra.mxu3 %v2836_v10 }
 0x190   : > { %v1026_v32 = vpop.f32.mrf.mxu2  ;;  %v1252_v7 = vpop.f32.mrf.mxu0 }
 0x191   : > { %v1027_v27 = vadd.f32 %v1026_v32, %v914_v8 }
 0x192   : > { %v916_v11 = vpop.f32.mrf.mxu1  ;;  %v1139_v53 = vpop.f32.mrf.mxu3 }
 0x193   : > { %v1140_v22 = vadd.f32 %v1139_v53, %v1027_v27  ;;  %1655 = vmatmul.f32.gmra.mxu0 %v2931_v40  ;;  %v917_v39 = vadd.f32 %v916_v11, %v2970_v20  ;;  %v3863_v20 = vld [vmem:[#allocation9_spill] sm:$0xff]  ;;  %v3864_v27 = vld [vmem:[#allocation18_spill] sm:$0xff] }
 0x194   : > { %v3865_v53 = vld [vmem:[#allocation22_spill] sm:$0xff] }
 0x195   : > { %v3479_v35 = vadd.f32 %v1252_v7, %v1140_v22  ;;  %1319 = vmatmul.f32.gmra.mxu1 %v2841_v44  ;;  %1432 = vmatmul.f32.gmra.mxu2 %v2136_v37  ;;  %v2137_v44 = vld [vmem:[%s2364_s19 + $0x98] sm:$0xff] }
 0x196   : > { %v3866_v37 = vld [vmem:[#allocation11_spill] sm:$0xff] }
 0x197   : > { %1545 = vmatmul.f32.gmra.mxu3 %v2861_v56 }
 0x198   : > { %v1029_v10 = vpop.f32.mrf.mxu2  ;;  %v1255_v45 = vpop.f32.mrf.mxu0 }
 0x199   : > { %v1030_v54 = vadd.f32 %v1029_v10, %v917_v39 }
 0x19a   : > { %v919_v18 = vpop.f32.mrf.mxu1  ;;  %v1142_v41 = vpop.f32.mrf.mxu3 }
 0x19b   : > { %v1143_v23 = vadd.f32 %v1142_v41, %v1030_v54  ;;  %1658 = vmatmul.f32.gmra.mxu0 %v3861_v26  ;;  %v920_v58 = vadd.f32 %v919_v18, %v3862_v16  ;;  %v3868_v16 = vld [vmem:[#allocation25_spill] sm:$0xff] }
 0x19d   : > { %v3486_v33 = vadd.f32 %v1255_v45, %v1143_v23  ;;  %1322 = vmatmul.f32.gmra.mxu1 %v2874_v5  ;;  %1435 = vmatmul.f32.gmra.mxu2 %v2137_v44  ;;  %v2138_v5 = vld [vmem:[%s2364_s19 + $0xa8] sm:$0xff] }
 0x19e   : > { %v3867_v23 = vld [vmem:[#allocation21_spill] sm:$0xff] }
 0x19f   : > { %1548 = vmatmul.f32.gmra.mxu3 %v3863_v20  ;;  %v3869_v20 = vld [vmem:[#allocation13_spill] sm:$0xff] }
 0x1a0   : > { %v1032_v56 = vpop.f32.mrf.mxu2  ;;  %v1258_v12 = vpop.f32.mrf.mxu0 }
 0x1a1   : > { %v1033_v24 = vadd.f32 %v1032_v56, %v920_v58 }
 0x1a2   : > { %v922_v8 = vpop.f32.mrf.mxu1  ;;  %v1145_v32 = vpop.f32.mrf.mxu3 }
 0x1a3   : > { %v1146_v7 = vadd.f32 %v1145_v32, %v1033_v24  ;;  %1661 = vmatmul.f32.gmra.mxu0 %v3864_v27  ;;  %v923_v22 = vadd.f32 %v922_v8, %v3865_v53 }
 0x1a5   : > { %v3493_v11 = vadd.f32 %v1258_v12, %v1146_v7  ;;  %1325 = vmatmul.f32.gmra.mxu1 %v2898_v46  ;;  %1438 = vmatmul.f32.gmra.mxu2 %v2138_v5  ;;  %v2139_v46 = vld [vmem:[%s2364_s19 + $0xb0] sm:$0xff]  ;;  %v3870_v5 = vld [vmem:[#allocation24_spill] sm:$0xff] }
 0x1a7   : > { %1551 = vmatmul.f32.gmra.mxu3 %v3866_v37 }
 0x1a8   : > { %v1035_v39 = vpop.f32.mrf.mxu2  ;;  %v1261_v10 = vpop.f32.mrf.mxu0 }
 0x1a9   : > { %v1036_v45 = vadd.f32 %v1035_v39, %v923_v22  ;;  %v3871_v22 = vld [vmem:[#allocation8_spill] sm:$0xff] }
 0x1aa   : > { %v925_v54 = vpop.f32.mrf.mxu1  ;;  %v1148_v18 = vpop.f32.mrf.mxu3  ;;  %v3872_v39 = vld [vmem:[#allocation16_spill] sm:$0xff] }
 0x1ab   : > { %v1149_v41 = vadd.f32 %v1148_v18, %v1036_v45  ;;  %1664 = vmatmul.f32.gmra.mxu0 %v3867_v23  ;;  %v926_v58 = vadd.f32 %v925_v54, %v3868_v16  ;;  %v3873_v16 = vld [vmem:[#allocation27_spill] sm:$0xff] }
 0x1ad   : > { %v3500_v44 = vadd.f32 %v1261_v10, %v1149_v41  ;;  %1328 = vmatmul.f32.gmra.mxu1 %v2931_v40  ;;  %1441 = vmatmul.f32.gmra.mxu2 %v2139_v46  ;;  %v2140_v40 = vld [vmem:[%s2364_s19 + $0xc0] sm:$0xff] }
 0x1af   : > { %1554 = vmatmul.f32.gmra.mxu3 %v3869_v20  ;;  %v3874_v20 = vld [vmem:[#allocation10_spill] sm:$0xff] }
 0x1b0   : > { %v1038_v56 = vpop.f32.mrf.mxu2  ;;  %v1264_v12 = vpop.f32.mrf.mxu0 }
 0x1b1   : > { %v1039_v24 = vadd.f32 %v1038_v56, %v926_v58 }
 0x1b2   : > { %v928_v8 = vpop.f32.mrf.mxu1  ;;  %v1151_v32 = vpop.f32.mrf.mxu3 }
 0x1b3   : > { %v1152_v7 = vadd.f32 %v1151_v32, %v1039_v24  ;;  %1667 = vmatmul.f32.gmra.mxu0 %v3870_v5  ;;  %v929_v37 = vadd.f32 %v928_v8, %v3871_v22 }
 0x1b5   : > { %v3507_v53 = vadd.f32 %v1264_v12, %v1152_v7  ;;  %1331 = vmatmul.f32.gmra.mxu1 %v3861_v26  ;;  %1444 = vmatmul.f32.gmra.mxu2 %v2140_v40  ;;  %v2141_v26 = vld [vmem:[%s2364_s19 + $0xc8] sm:$0xff] }
 0x1b7   : > { %1557 = vmatmul.f32.gmra.mxu3 %v3872_v39 }
 0x1b8   : > { %v1041_v10 = vpop.f32.mrf.mxu2  ;;  %v1267_v45 = vpop.f32.mrf.mxu0 }
 0x1b9   : > { %v1042_v54 = vadd.f32 %v1041_v10, %v929_v37  ;;  %v3875_v37 = vld [vmem:[#allocation12_spill] sm:$0xff] }
 0x1ba   : > { %v931_v18 = vpop.f32.mrf.mxu1  ;;  %v1154_v41 = vpop.f32.mrf.mxu3 }
 0x1bb   : > { %v1155_v46 = vadd.f32 %v1154_v41, %v1042_v54  ;;  %1670 = vmatmul.f32.gmra.mxu0 %v3873_v16  ;;  %v932_v56 = vadd.f32 %v931_v18, %v3874_v20 }
 0x1bd   : > { %v3514_v58 = vadd.f32 %v1267_v45, %v1155_v46  ;;  %1334 = vmatmul.f32.gmra.mxu1 %v3864_v27  ;;  %1447 = vmatmul.f32.gmra.mxu2 %v2141_v26  ;;  %v2142_v27 = vld [vmem:[%s2364_s19 + $0xd8] sm:$0xff] }
 0x1be   : > { %v3876_v26 = vld [vmem:[#allocation14_spill] sm:$0xff] }
 0x1bf   : > { %1560 = vmatmul.f32.gmra.mxu3 %v3005_v1 }
 0x1c0   : > { %v1044_v12 = vpop.f32.mrf.mxu2  ;;  %v1270_v24 = vpop.f32.mrf.mxu0 }
 0x1c1   : > { %v1045_v8 = vadd.f32 %v1044_v12, %v932_v56 }
 0x1c2   : > { %v934_v32 = vpop.f32.mrf.mxu1  ;;  %v1157_v7 = vpop.f32.mrf.mxu3 }
 0x1c3   : > { %v1158_v40 = vadd.f32 %v1157_v7, %v1045_v8  ;;  %1673 = vmatmul.f32.gmra.mxu0 %v3093_v38  ;;  %v935_v39 = vadd.f32 %v934_v32, %v3875_v37  ;;  %v3878_v37 = vld [vmem:[#allocation28_spill] sm:$0xff] }
 0x1c5   : > { %v3521_v22 = vadd.f32 %v1270_v24, %v1158_v40  ;;  %1337 = vmatmul.f32.gmra.mxu1 %v3867_v23  ;;  %1450 = vmatmul.f32.gmra.mxu2 %v2142_v27  ;;  %v2143_v23 = vld [vmem:[%s2364_s19 + $0xe0] sm:$0xff]  ;;  %v3877_v40 = vld [vmem:[#allocation17_spill] sm:$0xff] }
 0x1c7   : > { %1563 = vmatmul.f32.gmra.mxu3 %v3032_v19 }
 0x1c8   : > { %v1047_v1 = vpop.f32.mrf.mxu2  ;;  %v1273_v10 = vpop.f32.mrf.mxu0 }
 0x1c9   : > { %v1048_v45 = vadd.f32 %v1047_v1, %v935_v39 }
 0x1ca   : > { %v937_v54 = vpop.f32.mrf.mxu1  ;;  %v1160_v18 = vpop.f32.mrf.mxu3 }
 0x1cb   : > { %v1161_v41 = vadd.f32 %v1160_v18, %v1048_v45  ;;  %1676 = vmatmul.f32.gmra.mxu0 %v3112_v47  ;;  %v938_v20 = vadd.f32 %v937_v54, %v3876_v26  ;;  %v3879_v18 = vld [vmem:[#allocation32_spill] sm:$0xff] }
 0x1cd   : > { %v3528_v46 = vadd.f32 %v1273_v10, %v1161_v41  ;;  %1340 = vmatmul.f32.gmra.mxu1 %v3870_v5  ;;  %1453 = vmatmul.f32.gmra.mxu2 %v2143_v23  ;;  %v2144_v5 = vld [vmem:[%s2364_s19 + $0xf0] sm:$0xff]  ;;  %v3880_v23 = vld [vmem:[#allocation20_spill] sm:$0xff] }
 0x1cf   : > { %1566 = vmatmul.f32.gmra.mxu3 %v3062_v51 }
 0x1d0   : > { %v1050_v19 = vpop.f32.mrf.mxu2  ;;  %v1276_v56 = vpop.f32.mrf.mxu0 }
 0x1d1   : > { %v1051_v12 = vadd.f32 %v1050_v19, %v938_v20 }
 0x1d2   : > { %v940_v24 = vpop.f32.mrf.mxu1  ;;  %v1163_v8 = vpop.f32.mrf.mxu3 }
 0x1d3   : > { %v1164_v32 = vadd.f32 %v1163_v8, %v1051_v12  ;;  %1679 = vmatmul.f32.gmra.mxu0 %v3140_v63  ;;  %v941_v27 = vadd.f32 %v940_v24, %v3877_v40  ;;  %v3882_v40 = vld [vmem:[#allocation23_spill] sm:$0xff] }
 0x1d5   : > { %v3535_v7 = vadd.f32 %v1276_v56, %v1164_v32  ;;  %1343 = vmatmul.f32.gmra.mxu1 %v3873_v16  ;;  %1456 = vmatmul.f32.gmra.mxu2 %v2144_v5  ;;  %v2145_v16 = vld [vmem:[%s2364_s19 + $0xf8] sm:$0xff]  ;;  %v3881_v32 = vld [vmem:[#allocation36_spill] sm:$0xff] }
 0x1d7   : > { %1569 = vmatmul.f32.gmra.mxu3 %v3878_v37 }
 0x1d8   : > { %v1053_v51 = vpop.f32.mrf.mxu2  ;;  %v1279_v39 = vpop.f32.mrf.mxu0 }
 0x1d9   : > { %v1054_v1 = vadd.f32 %v1053_v51, %v941_v27 }
 0x1da   : > { %v943_v10 = vpop.f32.mrf.mxu1  ;;  %v1166_v45 = vpop.f32.mrf.mxu3 }
 0x1db   : > { %v1167_v54 = vadd.f32 %v1166_v45, %v1054_v1  ;;  %1682 = vmatmul.f32.gmra.mxu0 %v3879_v18  ;;  %v944_v26 = vadd.f32 %v943_v10, %v3880_v23 }
 0x1dd   : > { %v3542_v41 = vadd.f32 %v1279_v39, %v1167_v54  ;;  %1346 = vmatmul.f32.gmra.mxu1 %v3093_v38  ;;  %1459 = vmatmul.f32.gmra.mxu2 %v2145_v16  ;;  %v2146_v38 = vld [vmem:[%s2364_s19 + $0x108] sm:$0xff]  ;;  %v3883_v54 = vld [vmem:[#allocation26_spill] sm:$0xff] }
 0x1df   : > { %1572 = vmatmul.f32.gmra.mxu3 %v3109_v49 }
 0x1e0   : > { %v1056_v20 = vpop.f32.mrf.mxu2  ;;  %v1282_v19 = vpop.f32.mrf.mxu0 }
 0x1e1   : > { %v1057_v56 = vadd.f32 %v1056_v20, %v944_v26 }
 0x1e2   : > { %v946_v12 = vpop.f32.mrf.mxu1  ;;  %v1169_v24 = vpop.f32.mrf.mxu3 }
 0x1e3   : > { %v1170_v8 = vadd.f32 %v1169_v24, %v1057_v56  ;;  %1685 = vmatmul.f32.gmra.mxu0 %v3881_v32  ;;  %v947_v27 = vadd.f32 %v946_v12, %v3882_v40  ;;  %v3884_v12 = vld [vmem:[#allocation40_spill] sm:$0xff] }
 0x1e5   : > { %v3549_v5 = vadd.f32 %v1282_v19, %v1170_v8  ;;  %1349 = vmatmul.f32.gmra.mxu1 %v3112_v47  ;;  %1462 = vmatmul.f32.gmra.mxu2 %v2146_v38  ;;  %v2147_v47 = vld [vmem:[%s2364_s19 + $0x110] sm:$0xff] }
 0x1e6   : > { %v3885_v8 = vld [vmem:[#allocation33_spill] sm:$0xff] }
 0x1e7   : > { %1575 = vmatmul.f32.gmra.mxu3 %v3131_v60 }
 0x1e8   : > { %v1059_v49 = vpop.f32.mrf.mxu2  ;;  %v1285_v37 = vpop.f32.mrf.mxu0 }
 0x1e9   : > { %v1060_v51 = vadd.f32 %v1059_v49, %v947_v27 }
 0x1ea   : > { %v949_v39 = vpop.f32.mrf.mxu1  ;;  %v1172_v1 = vpop.f32.mrf.mxu3 }
 0x1eb   : > { %v1173_v10 = vadd.f32 %v1172_v1, %v1060_v51  ;;  %1688 = vmatmul.f32.gmra.mxu0 %v3212_v52  ;;  %v950_v16 = vadd.f32 %v949_v39, %v3883_v54  ;;  %v3888_v1 = vld [vmem:[#allocation30_spill] sm:$0xff] }
 0x1ed   : > { %v3556_v45 = vadd.f32 %v1285_v37, %v1173_v10  ;;  %1352 = vmatmul.f32.gmra.mxu1 %v3140_v63  ;;  %1465 = vmatmul.f32.gmra.mxu2 %v2147_v47  ;;  %v3886_v63 = vld [vmem:[#allocation29_spill] sm:$0xff] }
 0x1ef   : > { %1578 = vmatmul.f32.gmra.mxu3 %v3156_v30 }
 0x1f0   : > { %v1062_v60 = vpop.f32.mrf.mxu2  ;;  %v1288_v23 = vpop.f32.mrf.mxu0 }
 0x1f1   : > { %v1063_v26 = vadd.f32 %v1062_v60, %v950_v16 }
 0x1f2   : > { %v1175_v20 = vpop.f32.mrf.mxu3  ;;  %v1308_v19 = vpop.f32.mrf.mxu1 }
 0x1f3   : > { %v1176_v56 = vadd.f32 %v1175_v20, %v1063_v26  ;;  %1691 = vmatmul.f32.gmra.mxu0 %v3884_v12  ;;  %v1309_v38 = vadd.f32 %v1308_v19, %v3886_v63  ;;  %v3889_v26 = vld [vmem:[#allocation38_spill] sm:$0xff]  ;;  %v3890_v19 = vld [vmem:[#allocation31_spill] sm:$0xff] }
 0x1f5   : > { %v3563_v24 = vadd.f32 %v1288_v23, %v1176_v56  ;;  %1355 = vmatmul.f32.gmra.mxu1 %v3879_v18  ;;  %1468 = vmatmul.f32.gmra.mxu2 %v3885_v8  ;;  %v3887_v18 = vld [vmem:[#allocation34_spill] sm:$0xff] }
 0x1f7   : > { %1581 = vmatmul.f32.gmra.mxu3 %v3184_v15 }
 0x1f8   : > { %v1421_v30 = vpop.f32.mrf.mxu2  ;;  %v1647_v40 = vpop.f32.mrf.mxu0 }
 0x1f9   : > { %v1422_v27 = vadd.f32 %v1421_v30, %v1309_v38 }
 0x1fa   : > { %v1311_v49 = vpop.f32.mrf.mxu1  ;;  %v1534_v37 = vpop.f32.mrf.mxu3 }
 0x1fb   : > { %v1535_v51 = vadd.f32 %v1534_v37, %v1422_v27  ;;  %1694 = vmatmul.f32.gmra.mxu0 %v3265_v50  ;;  %v1312_v10 = vadd.f32 %v1311_v49, %v3888_v1 }
 0x1fd   : > { %v1648_v39 = vadd.f32 %v1647_v40, %v1535_v51  ;;  %1358 = vmatmul.f32.gmra.mxu1 %v3881_v32  ;;  %1471 = vmatmul.f32.gmra.mxu2 %v3887_v18  ;;  %v3891_v51 = vld [vmem:[#allocation42_spill] sm:$0xff] }
 0x1ff   : > { %1852 = vst [vmem:[%s3577_s28] sm:$0xff] %v1648_v39  ;;  %1584 = vmatmul.f32.gmra.mxu3 %v3209_v4  ;;  %v1780_v20 = vmul.f32 %v1648_v39, %v1648_v39 }
 0x200   : > { %v1424_v15 = vpop.f32.mrf.mxu2  ;;  %v1650_v47 = vpop.f32.mrf.mxu0 }
 0x201   : > { %v1425_v54 = vadd.f32 %v1424_v15, %v1312_v10 }
 0x202   : > { %v1314_v16 = vpop.f32.mrf.mxu1  ;;  %v1537_v60 = vpop.f32.mrf.mxu3 }
 0x203   : > { %v1538_v23 = vadd.f32 %v1537_v60, %v1425_v54  ;;  %1697 = vmatmul.f32.gmra.mxu0 %v3296_v61  ;;  %v1315_v56 = vadd.f32 %v1314_v16, %v3890_v19 }
 0x205   : > { %v1651_v32 = vadd.f32 %v1650_v47, %v1538_v23  ;;  %1361 = vmatmul.f32.gmra.mxu1 %v3212_v52  ;;  %1474 = vmatmul.f32.gmra.mxu2 %v3889_v26  ;;  %v3894_v26 = vld [vmem:[#allocation43_spill] sm:$0xff] }
 0x207   : > { %v1743_v8 = vadd.f32 %v1651_v32, %v1648_v39  ;;  %v1781_v63 = vmul.f32 %v1651_v32, %v1651_v32  ;;  %1853 = vst [vmem:[%s3577_s28 + $0x8] sm:$0xff] %v1651_v32  ;;  %1587 = vmatmul.f32.gmra.mxu3 %v3234_v17  ;;  %v3892_v39 = vld [vmem:[#allocation35_spill] sm:$0xff]  ;;  %v3893_v32 = vld [vmem:[#allocation48_spill] sm:$0xff] }
 0x208   : > { %v1427_v4 = vpop.f32.mrf.mxu2  ;;  %v1653_v38 = vpop.f32.mrf.mxu0 }
 0x209   : > { %v1812_v30 = vadd.f32 %v1781_v63, %v1780_v20  ;;  %v1428_v40 = vadd.f32 %v1427_v4, %v1315_v56  ;;  %v3895_v20 = vld [vmem:[#allocation37_spill] sm:$0xff] }
 0x20a   : > { %v1317_v27 = vpop.f32.mrf.mxu1  ;;  %v1540_v49 = vpop.f32.mrf.mxu3 }
 0x20b   : > { %v1541_v37 = vadd.f32 %v1540_v49, %v1428_v40  ;;  %1700 = vmatmul.f32.gmra.mxu0 %v3318_v3  ;;  %v1318_v18 = vadd.f32 %v1317_v27, %v3892_v39  ;;  %v3896_v49 = vld [vmem:[#allocation51_spill] sm:$0xff] }
 0x20d   : > { %v1654_v52 = vadd.f32 %v1653_v38, %v1541_v37  ;;  %1364 = vmatmul.f32.gmra.mxu1 %v3884_v12  ;;  %1477 = vmatmul.f32.gmra.mxu2 %v3891_v51  ;;  %v3897_v37 = vld [vmem:[#allocation46_spill] sm:$0xff] }
 0x20f   : > { %v1744_v1 = vadd.f32 %v1743_v8, %v1654_v52  ;;  %v1782_v10 = vmul.f32 %v1654_v52, %v1654_v52  ;;  %1854 = vst [vmem:[%s3577_s28 + $0x10] sm:$0xff] %v1654_v52  ;;  %1590 = vmatmul.f32.gmra.mxu3 %v3262_v6  ;;  %v3898_v52 = vld [vmem:[#allocation39_spill] sm:$0xff] }
 0x210   : > { %v1430_v17 = vpop.f32.mrf.mxu2  ;;  %v1656_v15 = vpop.f32.mrf.mxu0 }
 0x211   : > { %v1813_v47 = vadd.f32 %v1812_v30, %v1782_v10  ;;  %v1431_v54 = vadd.f32 %v1430_v17, %v1318_v18 }
 0x212   : > { %v1320_v16 = vpop.f32.mrf.mxu1  ;;  %v1543_v60 = vpop.f32.mrf.mxu3 }
 0x213   : > { %v1544_v23 = vadd.f32 %v1543_v60, %v1431_v54  ;;  %1703 = vmatmul.f32.gmra.mxu0 %v3893_v32  ;;  %v1321_v19 = vadd.f32 %v1320_v16, %v3895_v20  ;;  %v3899_v16 = vld [vmem:[#allocation41_spill] sm:$0xff] }
 0x215   : > { %v1657_v12 = vadd.f32 %v1656_v15, %v1544_v23  ;;  %1367 = vmatmul.f32.gmra.mxu1 %v3265_v50  ;;  %1480 = vmatmul.f32.gmra.mxu2 %v3894_v26 }
 0x217   : > { %v1745_v56 = vadd.f32 %v1744_v1, %v1657_v12  ;;  %v1783_v8 = vmul.f32 %v1657_v12, %v1657_v12  ;;  %1855 = vst [vmem:[%s3577_s28 + $0x18] sm:$0xff] %v1657_v12  ;;  %1593 = vmatmul.f32.gmra.mxu3 %v3287_v29 }
 0x218   : > { %v1433_v6 = vpop.f32.mrf.mxu2  ;;  %v1659_v63 = vpop.f32.mrf.mxu0 }
 0x219   : > { %v1814_v4 = vadd.f32 %v1813_v47, %v1783_v8  ;;  %v1434_v38 = vadd.f32 %v1433_v6, %v1321_v19 }
 0x21a   : > { %v1323_v30 = vpop.f32.mrf.mxu1  ;;  %v1546_v40 = vpop.f32.mrf.mxu3 }
 0x21b   : > { %v1547_v27 = vadd.f32 %v1546_v40, %v1434_v38  ;;  %1706 = vmatmul.f32.gmra.mxu0 %v3896_v49  ;;  %v1324_v51 = vadd.f32 %v1323_v30, %v3898_v52 }
 0x21d   : > { %v1660_v50 = vadd.f32 %v1659_v63, %v1547_v27  ;;  %1370 = vmatmul.f32.gmra.mxu1 %v3296_v61  ;;  %1483 = vmatmul.f32.gmra.mxu2 %v3897_v37 }
 0x21f   : > { %v1746_v39 = vadd.f32 %v1745_v56, %v1660_v50  ;;  %v1784_v18 = vmul.f32 %v1660_v50, %v1660_v50  ;;  %1856 = vst [vmem:[%s3577_s28 + $0x20] sm:$0xff] %v1660_v50  ;;  %1596 = vmatmul.f32.gmra.mxu3 %v3315_v43 }
 0x220   : > { %v1436_v29 = vpop.f32.mrf.mxu2  ;;  %v1662_v1 = vpop.f32.mrf.mxu0 }
 0x221   : > { %v1815_v10 = vadd.f32 %v1814_v4, %v1784_v18  ;;  %v1437_v17 = vadd.f32 %v1436_v29, %v1324_v51 }
 0x222   : > { %v1326_v15 = vpop.f32.mrf.mxu1  ;;  %v1549_v47 = vpop.f32.mrf.mxu3 }
 0x223   : > { %v1550_v54 = vadd.f32 %v1549_v47, %v1437_v17  ;;  %1709 = vmatmul.f32.gmra.mxu0 %v3396_v59  ;;  %v1327_v60 = vadd.f32 %v1326_v15, %v3899_v16 }
 0x225   : > { %v1663_v61 = vadd.f32 %v1662_v1, %v1550_v54  ;;  %1373 = vmatmul.f32.gmra.mxu1 %v3318_v3  ;;  %1486 = vmatmul.f32.gmra.mxu2 %v3333_v55  ;;  %v3900_v55 = vld [vmem:[#allocation44_spill] sm:$0xff] }
 0x227   : > { %v1747_v23 = vadd.f32 %v1746_v39, %v1663_v61  ;;  %v1785_v12 = vmul.f32 %v1663_v61, %v1663_v61  ;;  %1857 = vst [vmem:[%s3577_s28 + $0x28] sm:$0xff] %v1663_v61  ;;  %1599 = vmatmul.f32.gmra.mxu3 %v3340_v21 }
 0x228   : > { %v1439_v43 = vpop.f32.mrf.mxu2  ;;  %v1665_v26 = vpop.f32.mrf.mxu0 }
 0x229   : > { %v1816_v20 = vadd.f32 %v1815_v10, %v1785_v12  ;;  %v1440_v19 = vadd.f32 %v1439_v43, %v1327_v60  ;;  %v3903_v10 = vld [vmem:[#allocation53_spill] sm:$0xff]  ;;  %v3905_v43 = vld [vmem:[#allocation47_spill] sm:$0xff] }
 0x22a   : > { %v1329_v56 = vpop.f32.mrf.mxu1  ;;  %v1552_v8 = vpop.f32.mrf.mxu3 }
 0x22b   : > { %v1553_v6 = vadd.f32 %v1552_v8, %v1440_v19  ;;  %1712 = vmatmul.f32.gmra.mxu0 %v3415_v36  ;;  %v1330_v63 = vadd.f32 %v1329_v56, %v3900_v55  ;;  %v3906_v56 = vld [vmem:[#allocation56_spill] sm:$0xff] }
 0x22d   : > { %v1666_v3 = vadd.f32 %v1665_v26, %v1553_v6  ;;  %1376 = vmatmul.f32.gmra.mxu1 %v3893_v32  ;;  %1489 = vmatmul.f32.gmra.mxu2 %v3361_v14  ;;  %v534_v32 = vrot.slane %v3377_v2, 4  ;;  %v3901_v14 = vld [vmem:[#allocation50_spill] sm:$0xff] }
 0x22e   : > { %v535_v51 = vrot.slane %v3901_v14, 4 }
 0x22f   : > { %v1748_v4 = vadd.f32 %v1747_v23, %v1666_v3  ;;  %v1786_v38 = vmul.f32 %v1666_v3, %v1666_v3  ;;  %1858 = vst [vmem:[%s3577_s28 + $0x30] sm:$0xff] %v1666_v3  ;;  %1602 = vmatmul.f32.gmra.mxu3 %v3368_v13  ;;  %v3902_v13 = vld [vmem:[#allocation45_spill] sm:$0xff] }
 0x230   : > { %v1442_v21 = vpop.f32.mrf.mxu2  ;;  %v1668_v30 = vpop.f32.mrf.mxu0  ;;  %v3626_v47 = vsel %vm401_vm1, %v534_v32, %v535_v51 }
 0x231   : > { %v1817_v40 = vadd.f32 %v1816_v20, %v1786_v38  ;;  %v1443_v27 = vadd.f32 %v1442_v21, %v1330_v63  ;;  %v539_v21 = vrot.slane %v3418_v31, 4 }
 0x232   : > { %v1332_v50 = vpop.f32.mrf.mxu1  ;;  %v1555_v37 = vpop.f32.mrf.mxu3 }
 0x233   : > { %v1556_v52 = vadd.f32 %v1555_v37, %v1443_v27  ;;  %1715 = vmatmul.f32.gmra.mxu0 %v3437_v25  ;;  %v1333_v18 = vadd.f32 %v1332_v50, %v3902_v13  ;;  %v3907_v27 = vld [vmem:[#allocation49_spill] sm:$0xff] }
 0x235   : > { %v1669_v39 = vadd.f32 %v1668_v30, %v1556_v52  ;;  %1379 = vmatmul.f32.gmra.mxu1 %v3896_v49  ;;  %1492 = vmatmul.f32.gmra.mxu2 %v3377_v2  ;;  %v3904_v2 = vld [vmem:[#allocation54_spill] sm:$0xff]  ;;  %v540_v30 = vrot.slane %v3412_v0, 4 }
 0x236   : > { %v537_v23 = vrot.slane %v3904_v2, 4 }
 0x237   : > { %v1749_v29 = vadd.f32 %v1748_v4, %v1669_v39  ;;  %v1787_v1 = vmul.f32 %v1669_v39, %v1669_v39  ;;  %1859 = vst [vmem:[%s3577_s28 + $0x38] sm:$0xff] %v1669_v39  ;;  %1605 = vmatmul.f32.gmra.mxu3 %v3903_v10  ;;  %v235_v10 = vld [vmem:[%s2364_s19 + $0x1b8] sm:$0xff] }
 0x238   : > { %v1445_v17 = vpop.f32.mrf.mxu2  ;;  %v1671_v15 = vpop.f32.mrf.mxu0  ;;  %v3636_v3 = vsel %vm401_vm1, %v535_v51, %v537_v23  ;;  %v3647_v51 = vsel %vm401_vm1, %v539_v21, %v540_v30  ;;  %v555_v2 = vrot.slane %v235_v10, 2 }
 0x239   : > { %v1818_v54 = vadd.f32 %v1817_v40, %v1787_v1  ;;  %v1446_v61 = vadd.f32 %v1445_v17, %v1333_v18  ;;  %v3908_v17 = vld [vmem:[#allocation52_spill] sm:$0xff] }
 0x23a   : > { %v1335_v16 = vpop.f32.mrf.mxu1  ;;  %v1558_v60 = vpop.f32.mrf.mxu3 }
 0x23b   : > { %v1559_v49 = vadd.f32 %v1558_v60, %v1446_v61  ;;  %1718 = vmatmul.f32.gmra.mxu0 %v3626_v47  ;;  %v1336_v26 = vadd.f32 %v1335_v16, %v3905_v43 }
 0x23d   : > { %v1672_v12 = vadd.f32 %v1671_v15, %v1559_v49  ;;  %1382 = vmatmul.f32.gmra.mxu1 %v3396_v59  ;;  %1495 = vmatmul.f32.gmra.mxu2 %v3901_v14 }
 0x23f   : > { %v1750_v20 = vadd.f32 %v1749_v29, %v1672_v12  ;;  %v1788_v19 = vmul.f32 %v1672_v12, %v1672_v12  ;;  %1860 = vst [vmem:[%s3577_s28 + $0x40] sm:$0xff] %v1672_v12  ;;  %1608 = vmatmul.f32.gmra.mxu3 %v3906_v56  ;;  %v542_v29 = vrot.slane %v3434_v62, 4  ;;  %v236_v56 = vld [vmem:[%s2364_s19 + $0x1c0] sm:$0xf] }
 0x240   : > { %v1448_v8 = vpop.f32.mrf.mxu2  ;;  %v1674_v6 = vpop.f32.mrf.mxu0 }
 0x241   : > { %v1819_v55 = vadd.f32 %v1818_v54, %v1788_v19  ;;  %v1449_v63 = vadd.f32 %v1448_v8, %v1336_v26  ;;  %v3659_v62 = vsel %vm401_vm1, %v540_v30, %v542_v29  ;;  %v3909_v8 = vld [vmem:[#allocation55_spill] sm:$0xff] }
 0x242   : > { %v1338_v4 = vpop.f32.mrf.mxu1  ;;  %v1561_v38 = vpop.f32.mrf.mxu3 }
 0x243   : > { %v1562_v59 = vadd.f32 %v1561_v38, %v1449_v63  ;;  %1721 = vmatmul.f32.gmra.mxu0 %v3636_v3  ;;  %v1339_v50 = vadd.f32 %v1338_v4, %v3907_v27 }
 0x245   : > { %v1675_v40 = vadd.f32 %v1674_v6, %v1562_v59  ;;  %1385 = vmatmul.f32.gmra.mxu1 %v3415_v36  ;;  %1498 = vmatmul.f32.gmra.mxu2 %v3418_v31  ;;  %v557_v59 = vrot.slane %v236_v56, 2 }
 0x247   : > { %v1751_v37 = vadd.f32 %v1750_v20, %v1675_v40  ;;  %v1789_v52 = vmul.f32 %v1675_v40, %v1675_v40  ;;  %1861 = vst [vmem:[%s3577_s28 + $0x48] sm:$0xff] %v1675_v40  ;;  %1611 = vmatmul.f32.gmra.mxu3 %v3431_v34  ;;  %v234_v34 = vld [vmem:[%s2364_s19 + $0x1b0] sm:$0xff] }
 0x248   : > { %v1451_v32 = vpop.f32.mrf.mxu2  ;;  %v1677_v14 = vpop.f32.mrf.mxu0  ;;  %v554_v49 = vrot.slane %v234_v34, 2  ;;  %v568_v26 = vrot.slane %v234_v34, 4 }
 0x249   : > { %v1820_v39 = vadd.f32 %v1819_v55, %v1789_v52  ;;  %v1452_v13 = vadd.f32 %v1451_v32, %v1339_v50  ;;  %v571_v52 = vrot.slane %v236_v56, 4 }
 0x24a   : > { %v1341_v36 = vpop.f32.mrf.mxu1  ;;  %v1564_v18 = vpop.f32.mrf.mxu3  ;;  %v556_v20 = vsel %vm288_vm0, %v554_v49, %v555_v2 }
 0x24b   : > { %v1565_v31 = vadd.f32 %v1564_v18, %v1452_v13  ;;  %1724 = vmatmul.f32.gmra.mxu0 %v3647_v51  ;;  %v1342_v15 = vadd.f32 %v1341_v36, %v3908_v17  ;;  %v3910_v13 = vld [vmem:[#allocation57_spill] sm:$0xff] }
 0x24d   : > { %v1678_v1 = vadd.f32 %v1677_v14, %v1565_v31  ;;  %1388 = vmatmul.f32.gmra.mxu1 %v3437_v25  ;;  %1501 = vmatmul.f32.gmra.mxu2 %v3412_v0  ;;  %v237_v14 = vld [vmem:[%s2364_s19 + $0x1c8] sm:$0xff] }
 0x24f   : > { %v1752_v54 = vadd.f32 %v1751_v37, %v1678_v1  ;;  %v1790_v61 = vmul.f32 %v1678_v1, %v1678_v1  ;;  %1862 = vst [vmem:[%s3577_s28 + $0x50] sm:$0xff] %v1678_v1  ;;  %1614 = vmatmul.f32.gmra.mxu3 %v3448_v48  ;;  %v569_v48 = vrot.slane %v235_v10, 4  ;;  %v558_v37 = vsel %vm288_vm0, %v555_v2, %v557_v59 }
 0x250   : > { %v1454_v16 = vpop.f32.mrf.mxu2  ;;  %v1680_v60 = vpop.f32.mrf.mxu0 }
 0x251   : > { %v1821_v25 = vadd.f32 %v1820_v39, %v1790_v61  ;;  %v1455_v0 = vadd.f32 %v1454_v16, %v1342_v15  ;;  %v570_v21 = vsel %vm401_vm1, %v568_v26, %v569_v48  ;;  %v238_v39 = vld [vmem:[%s2364_s19 + $0x1d0] sm:$0xff]  ;;  %v572_v15 = vsel %vm401_vm1, %v569_v48, %v571_v52 }
 0x252   : > { %v1344_v23 = vpop.f32.mrf.mxu1  ;;  %v1567_v12 = vpop.f32.mrf.mxu3  ;;  %v560_v17 = vrot.slane %v238_v39, 2  ;;  %v574_v2 = vrot.slane %v238_v39, 4 }
 0x253   : > { %v1568_v43 = vadd.f32 %v1567_v12, %v1455_v0  ;;  %1727 = vmatmul.f32.gmra.mxu0 %v3659_v62  ;;  %v1345_v6 = vadd.f32 %v1344_v23, %v3909_v8  ;;  %v239_v0 = vld [vmem:[%s2364_s19 + $0x1d8] sm:$0xf]  ;;  %s2028_s19 = sshll.u32 %s2287_s16, 8 }
 0x254   : > { %v3911_v23 = vld [vmem:[#allocation58_spill] sm:$0xff]  ;;  %s1901_s4 = scalar_lea.hbm %s3770_s2, %s2028_s19 }
 0x255   : > { %v1681_v19 = vadd.f32 %v1680_v60, %v1568_v43  ;;  %1391 = vmatmul.f32.gmra.mxu1 %v3626_v47  ;;  %1504 = vmatmul.f32.gmra.mxu2 %v234_v34  ;;  %v559_v34 = vrot.slane %v237_v14, 2  ;;  %v573_v60 = vrot.slane %v237_v14, 4  ;;  %s1904_s6 = sshll.u32 %s1901_s4, 4  ;;  %s1905_s6 = int_to_ptr.hbm [resolvable:$true] %s1904_s6 }
 0x256   : > { %s2162_s8 = sshra.s32 %s1905_s6, 4  ;;  %s2163_s8 = int_to_ptr.hbm [resolvable:$true] %s2162_s8 }
 0x257   : > { %v1753_v55 = vadd.f32 %v1752_v54, %v1681_v19  ;;  %v1791_v63 = vmul.f32 %v1681_v19, %v1681_v19  ;;  %1863 = vst [vmem:[%s3577_s28 + $0x58] sm:$0xff] %v1681_v19  ;;  %1617 = vmatmul.f32.gmra.mxu3 %v556_v20  ;;  %v561_v49 = vsel %vm288_vm0, %v559_v34, %v560_v17  ;;  %v562_v19 = vrot.slane %v239_v0, 2  ;;  %s2164_s9 = scalar_lea.hbm %s2163_s8, 256  ;;  %p2169_p0 = scmp.lt.s32.totalorder %s2163_s8, %s3770_s2 }
 0x258   : > { %v1457_v4 = vpop.f32.mrf.mxu2  ;;  %v1683_v38 = vpop.f32.mrf.mxu0  ;;  %v575_v56 = vsel %vm401_vm1, %v573_v60, %v574_v2  ;;  %p2165_p11 = scmp.ne.s32.totalorder %s2163_s8, %s2164_s9  ;;  %p2170_p1 = scmp.lt.s32.totalorder %s2168_s17, %s2164_s9 }
 0x259   : > { %v1822_v30 = vadd.f32 %v1821_v25, %v1791_v63  ;;  %v1458_v40 = vadd.f32 %v1457_v4, %v1345_v6 }
 0x25a   : > { %v1347_v27 = vpop.f32.mrf.mxu1  ;;  %v1570_v47 = vpop.f32.mrf.mxu3  ;;  %p2166_p12 = pnand %p2165_p11, %p2304_p5  ;;  %p2171_p2 = por %p2170_p1, %p2169_p0 }
 0x25b   : > { %v1571_v50 = vadd.f32 %v1570_v47, %v1458_v40  ;;  %1730 = vmatmul.f32.gmra.mxu0 %v570_v21  ;;  %v1348_v36 = vadd.f32 %v1347_v27, %v3910_v13 }
 0x25c   : > { %p2167_p13 = pneg %p2166_p12 }
 0x25d   : > { %v1684_v32 = vadd.f32 %v1683_v38, %v1571_v50  ;;  %1394 = vmatmul.f32.gmra.mxu1 %v3636_v3  ;;  %1507 = vmatmul.f32.gmra.mxu2 %v235_v10  ;;  %v576_v38 = vrot.slane %v239_v0, 4 }
 0x25e   : > { %p2172_p3 = pnand %p2171_p2, %p2167_p13 }
 0x25f   : > { %v1754_v18 = vadd.f32 %v1753_v55, %v1684_v32  ;;  %v1792_v31 = vmul.f32 %v1684_v32, %v1684_v32  ;;  %1864 = vst [vmem:[%s3577_s28 + $0x60] sm:$0xff] %v1684_v32  ;;  %1620 = vmatmul.f32.gmra.mxu3 %v558_v37  ;;  %v577_v50 = vsel %vm401_vm1, %v574_v2, %v576_v38 }
 0x260   : > { %v1460_v29 = vpop.f32.mrf.mxu2  ;;  %v1686_v1 = vpop.f32.mrf.mxu0 }
 0x261   : > { %v1823_v54 = vadd.f32 %v1822_v30, %v1792_v31  ;;  %v1461_v61 = vadd.f32 %v1460_v29, %v1348_v36 }
 0x262   : > { %v1350_v3 = vpop.f32.mrf.mxu1  ;;  %v1573_v10 = vpop.f32.mrf.mxu3 }
 0x263   : > { %v1574_v16 = vadd.f32 %v1573_v10, %v1461_v61  ;;  %1733 = vmatmul.f32.gmra.mxu0 %v572_v15  ;;  %v1351_v12 = vadd.f32 %v1350_v3, %v3911_v23 }
 0x265   : > { %v1687_v25 = vadd.f32 %v1686_v1, %v1574_v16  ;;  %1397 = vmatmul.f32.gmra.mxu1 %v3647_v51  ;;  %1510 = vmatmul.f32.gmra.mxu2 %v237_v14  ;;  %v563_v51 = vsel %vm288_vm0, %v560_v17, %v562_v19 }
 0x267   : > { %v1755_v43 = vadd.f32 %v1754_v18, %v1687_v25  ;;  %v1793_v26 = vmul.f32 %v1687_v25, %v1687_v25  ;;  %1865 = vst [vmem:[%s3577_s28 + $0x68] sm:$0xff] %v1687_v25  ;;  %1623 = vmatmul.f32.gmra.mxu3 %v561_v49 }
 0x268   : > { %v1463_v20 = vpop.f32.mrf.mxu2  ;;  %v1689_v48 = vpop.f32.mrf.mxu0 }
 0x269   : > { %v1824_v8 = vadd.f32 %v1823_v54, %v1793_v26  ;;  %v1464_v6 = vadd.f32 %v1463_v20, %v1351_v12 }
 0x26a   : > { %v1353_v55 = vpop.f32.mrf.mxu1  ;;  %v1576_v63 = vpop.f32.mrf.mxu3 }
 0x26b   : > { %v1577_v4 = vadd.f32 %v1576_v63, %v1464_v6  ;;  %1736 = vmatmul.f32.gmra.mxu0 %v575_v56  ;;  %v1354_v21 = vadd.f32 %v1353_v55, %v3451_v42 }
 0x26d   : > { %v1690_v59 = vadd.f32 %v1689_v48, %v1577_v4  ;;  %1400 = vmatmul.f32.gmra.mxu1 %v3659_v62  ;;  %1513 = vmatmul.f32.gmra.mxu2 %v238_v39 }
 0x26f   : > { %v1756_v30 = vadd.f32 %v1755_v43, %v1690_v59  ;;  %v1794_v40 = vmul.f32 %v1690_v59, %v1690_v59  ;;  %1866 = vst [vmem:[%s3577_s28 + $0x70] sm:$0xff] %v1690_v59  ;;  %1626 = vmatmul.f32.gmra.mxu3 %v563_v51 }
 0x270   : > { %v1466_v27 = vpop.f32.mrf.mxu2  ;;  %v1692_v47 = vpop.f32.mrf.mxu0 }
 0x271   : > { %v1825_v37 = vadd.f32 %v1824_v8, %v1794_v40  ;;  %v1467_v52 = vadd.f32 %v1466_v27, %v1354_v21 }
 0x272   : > { %v1356_v32 = vpop.f32.mrf.mxu1  ;;  %v1579_v14 = vpop.f32.mrf.mxu3 }
 0x273   : > { %v1580_v13 = vadd.f32 %v1579_v14, %v1467_v52  ;;  %1739 = vmatmul.f32.gmra.mxu0 %v577_v50  ;;  %v1357_v62 = vadd.f32 %v1356_v32, %v3458_v57 }
 0x275   : > { %v1693_v36 = vadd.f32 %v1692_v47, %v1580_v13 }
 0x277   : > { %v1757_v42 = vadd.f32 %v1756_v30, %v1693_v36  ;;  %v1795_v39 = vmul.f32 %v1693_v36, %v1693_v36  ;;  %1867 = vst [vmem:[%s3577_s28 + $0x78] sm:$0xff] %v1693_v36 }
 0x278   : > { %v1469_v18 = vpop.f32.mrf.mxu2  ;;  %v1695_v31 = vpop.f32.mrf.mxu0 }
 0x279   : > { %v1826_v29 = vadd.f32 %v1825_v37, %v1795_v39  ;;  %v1470_v1 = vadd.f32 %v1469_v18, %v1357_v62 }
 0x27a   : > { %v1359_v34 = vpop.f32.mrf.mxu1  ;;  %v1582_v17 = vpop.f32.mrf.mxu3 }
 0x27b   : > { %v1583_v15 = vadd.f32 %v1582_v17, %v1470_v1  ;;  %v1360_v61 = vadd.f32 %v1359_v34, %v3465_v9 }
 0x27d   : > { %v1696_v54 = vadd.f32 %v1695_v31, %v1583_v15 }
 0x27f   : > { %v1758_v3 = vadd.f32 %v1757_v42, %v1696_v54  ;;  %v1796_v10 = vmul.f32 %v1696_v54, %v1696_v54  ;;  %1868 = vst [vmem:[%s3577_s28 + $0x80] sm:$0xff] %v1696_v54 }
 0x280   : > { %v1472_v16 = vpop.f32.mrf.mxu2  ;;  %v1698_v60 = vpop.f32.mrf.mxu0 }
 0x281   : > { %v1827_v57 = vadd.f32 %v1826_v29, %v1796_v10  ;;  %v1473_v49 = vadd.f32 %v1472_v16, %v1360_v61 }
 0x282   : > { %v1362_v2 = vpop.f32.mrf.mxu1  ;;  %v1585_v25 = vpop.f32.mrf.mxu3 }
 0x283   : > { %v1586_v0 = vadd.f32 %v1585_v25, %v1473_v49  ;;  %v1363_v12 = vadd.f32 %v1362_v2, %v3472_v28 }
 0x285   : > { %v1699_v23 = vadd.f32 %v1698_v60, %v1586_v0 }
 0x287   : > { %v1759_v43 = vadd.f32 %v1758_v3, %v1699_v23  ;;  %v1797_v26 = vmul.f32 %v1699_v23, %v1699_v23  ;;  %1869 = vst [vmem:[%s3577_s28 + $0x88] sm:$0xff] %v1699_v23 }
 0x288   : > { %v1475_v20 = vpop.f32.mrf.mxu2  ;;  %v1701_v48 = vpop.f32.mrf.mxu0 }
 0x289   : > { %v1828_v9 = vadd.f32 %v1827_v57, %v1797_v26  ;;  %v1476_v19 = vadd.f32 %v1475_v20, %v1363_v12 }
 0x28a   : > { %v1365_v56 = vpop.f32.mrf.mxu1  ;;  %v1588_v8 = vpop.f32.mrf.mxu3 }
 0x28b   : > { %v1589_v6 = vadd.f32 %v1588_v8, %v1476_v19  ;;  %v1366_v63 = vadd.f32 %v1365_v56, %v3479_v35 }
 0x28d   : > { %v1702_v55 = vadd.f32 %v1701_v48, %v1589_v6 }
 0x28f   : > { %v1760_v4 = vadd.f32 %v1759_v43, %v1702_v55  ;;  %v1798_v51 = vmul.f32 %v1702_v55, %v1702_v55  ;;  %1870 = vst [vmem:[%s3577_s28 + $0x90] sm:$0xff] %v1702_v55 }
 0x290   : > { %v1478_v38 = vpop.f32.mrf.mxu2  ;;  %v1704_v59 = vpop.f32.mrf.mxu0 }
 0x291   : > { %v1829_v28 = vadd.f32 %v1828_v9, %v1798_v51  ;;  %v1479_v21 = vadd.f32 %v1478_v38, %v1366_v63 }
 0x292   : > { %v1368_v30 = vpop.f32.mrf.mxu1  ;;  %v1591_v40 = vpop.f32.mrf.mxu3 }
 0x293   : > { %v1592_v27 = vadd.f32 %v1591_v40, %v1479_v21  ;;  %v1369_v50 = vadd.f32 %v1368_v30, %v3486_v33 }
 0x295   : > { %v1705_v47 = vadd.f32 %v1704_v59, %v1592_v27 }
 0x297   : > { %v1761_v37 = vadd.f32 %v1760_v4, %v1705_v47  ;;  %v1799_v52 = vmul.f32 %v1705_v47, %v1705_v47  ;;  %1871 = vst [vmem:[%s3577_s28 + $0x98] sm:$0xff] %v1705_v47 }
 0x298   : > { %v1481_v32 = vpop.f32.mrf.mxu2  ;;  %v1707_v14 = vpop.f32.mrf.mxu0 }
 0x299   : > { %v1830_v35 = vadd.f32 %v1829_v28, %v1799_v52  ;;  %v1482_v13 = vadd.f32 %v1481_v32, %v1369_v50 }
 0x29a   : > { %v1371_v36 = vpop.f32.mrf.mxu1  ;;  %v1594_v62 = vpop.f32.mrf.mxu3 }
 0x29b   : > { %v1595_v42 = vadd.f32 %v1594_v62, %v1482_v13  ;;  %v1372_v18 = vadd.f32 %v1371_v36, %v3493_v11 }
 0x29d   : > { %v1708_v39 = vadd.f32 %v1707_v14, %v1595_v42 }
 0x29f   : > { %v1762_v31 = vadd.f32 %v1761_v37, %v1708_v39  ;;  %v1800_v29 = vmul.f32 %v1708_v39, %v1708_v39  ;;  %1872 = vst [vmem:[%s3577_s28 + $0xa0] sm:$0xff] %v1708_v39 }
 0x2a0   : > { %v1484_v1 = vpop.f32.mrf.mxu2  ;;  %v1710_v34 = vpop.f32.mrf.mxu0 }
 0x2a1   : > { %v1831_v33 = vadd.f32 %v1830_v35, %v1800_v29  ;;  %v1485_v17 = vadd.f32 %v1484_v1, %v1372_v18 }
 0x2a2   : > { %v1374_v15 = vpop.f32.mrf.mxu1  ;;  %v1597_v54 = vpop.f32.mrf.mxu3 }
 0x2a3   : > { %v1598_v61 = vadd.f32 %v1597_v54, %v1485_v17  ;;  %v1375_v10 = vadd.f32 %v1374_v15, %v3500_v44 }
 0x2a5   : > { %v1711_v3 = vadd.f32 %v1710_v34, %v1598_v61 }
 0x2a7   : > { %v1763_v16 = vadd.f32 %v1762_v31, %v1711_v3  ;;  %v1801_v60 = vmul.f32 %v1711_v3, %v1711_v3  ;;  %1873 = vst [vmem:[%s3577_s28 + $0xa8] sm:$0xff] %v1711_v3 }
 0x2a8   : > { %v1487_v57 = vpop.f32.mrf.mxu2  ;;  %v1713_v49 = vpop.f32.mrf.mxu0 }
 0x2a9   : > { %v1832_v11 = vadd.f32 %v1831_v33, %v1801_v60  ;;  %v1488_v2 = vadd.f32 %v1487_v57, %v1375_v10 }
 0x2aa   : > { %v1377_v25 = vpop.f32.mrf.mxu1  ;;  %v1600_v0 = vpop.f32.mrf.mxu3 }
 0x2ab   : > { %v1601_v23 = vadd.f32 %v1600_v0, %v1488_v2  ;;  %v1378_v43 = vadd.f32 %v1377_v25, %v3507_v53 }
 0x2ad   : > { %v1714_v12 = vadd.f32 %v1713_v49, %v1601_v23 }
 0x2af   : > { %v1764_v26 = vadd.f32 %v1763_v16, %v1714_v12  ;;  %v1802_v20 = vmul.f32 %v1714_v12, %v1714_v12  ;;  %1874 = vst [vmem:[%s3577_s28 + $0xb0] sm:$0xff] %v1714_v12 }
 0x2b0   : > { %v1490_v48 = vpop.f32.mrf.mxu2  ;;  %v1716_v9 = vpop.f32.mrf.mxu0 }
 0x2b1   : > { %v1833_v44 = vadd.f32 %v1832_v11, %v1802_v20  ;;  %v1491_v19 = vadd.f32 %v1490_v48, %v1378_v43 }
 0x2b2   : > { %v1380_v56 = vpop.f32.mrf.mxu1  ;;  %v1603_v8 = vpop.f32.mrf.mxu3 }
 0x2b3   : > { %v1604_v6 = vadd.f32 %v1603_v8, %v1491_v19  ;;  %v1381_v63 = vadd.f32 %v1380_v56, %v3514_v58 }
 0x2b5   : > { %v1717_v55 = vadd.f32 %v1716_v9, %v1604_v6 }
 0x2b7   : > { %v1765_v4 = vadd.f32 %v1764_v26, %v1717_v55  ;;  %v1803_v51 = vmul.f32 %v1717_v55, %v1717_v55  ;;  %1875 = vst [vmem:[%s3577_s28 + $0xb8] sm:$0xff] %v1717_v55 }
 0x2b8   : > { %v1493_v38 = vpop.f32.mrf.mxu2  ;;  %v1719_v59 = vpop.f32.mrf.mxu0 }
 0x2b9   : > { %v1834_v53 = vadd.f32 %v1833_v44, %v1803_v51  ;;  %v1494_v28 = vadd.f32 %v1493_v38, %v1381_v63 }
 0x2ba   : > { %v1383_v21 = vpop.f32.mrf.mxu1  ;;  %v1606_v30 = vpop.f32.mrf.mxu3 }
 0x2bb   : > { %v1607_v40 = vadd.f32 %v1606_v30, %v1494_v28  ;;  %v1384_v47 = vadd.f32 %v1383_v21, %v3521_v22 }
 0x2bd   : > { %v1720_v27 = vadd.f32 %v1719_v59, %v1607_v40 }
 0x2bf   : > { %v1766_v50 = vadd.f32 %v1765_v4, %v1720_v27  ;;  %v1804_v37 = vmul.f32 %v1720_v27, %v1720_v27  ;;  %1876 = vst [vmem:[%s3577_s28 + $0xc0] sm:$0xff] %v1720_v27 }
 0x2c0   : > { %v1496_v52 = vpop.f32.mrf.mxu2  ;;  %v1722_v32 = vpop.f32.mrf.mxu0 }
 0x2c1   : > { %v1835_v58 = vadd.f32 %v1834_v53, %v1804_v37  ;;  %v1497_v14 = vadd.f32 %v1496_v52, %v1384_v47 }
 0x2c2   : > { %v1386_v35 = vpop.f32.mrf.mxu1  ;;  %v1609_v13 = vpop.f32.mrf.mxu3 }
 0x2c3   : > { %v1610_v36 = vadd.f32 %v1609_v13, %v1497_v14  ;;  %v1387_v42 = vadd.f32 %v1386_v35, %v3528_v46 }
 0x2c5   : > { %v1723_v62 = vadd.f32 %v1722_v32, %v1610_v36 }
 0x2c7   : > { %v1767_v39 = vadd.f32 %v1766_v50, %v1723_v62  ;;  %v1805_v18 = vmul.f32 %v1723_v62, %v1723_v62  ;;  %1877 = vst [vmem:[%s3577_s28 + $0xc8] sm:$0xff] %v1723_v62 }
 0x2c8   : > { %v1499_v31 = vpop.f32.mrf.mxu2  ;;  %v1725_v29 = vpop.f32.mrf.mxu0 }
 0x2c9   : > { %v1836_v22 = vadd.f32 %v1835_v58, %v1805_v18  ;;  %v1500_v1 = vadd.f32 %v1499_v31, %v1387_v42 }
 0x2ca   : > { %v1389_v34 = vpop.f32.mrf.mxu1  ;;  %v1612_v33 = vpop.f32.mrf.mxu3 }
 0x2cb   : > { %v1613_v17 = vadd.f32 %v1612_v33, %v1500_v1  ;;  %v1390_v54 = vadd.f32 %v1389_v34, %v3535_v7 }
 0x2cd   : > { %v1726_v15 = vadd.f32 %v1725_v29, %v1613_v17 }
 0x2cf   : > { %v1768_v61 = vadd.f32 %v1767_v39, %v1726_v15  ;;  %v1806_v3 = vmul.f32 %v1726_v15, %v1726_v15  ;;  %1878 = vst [vmem:[%s3577_s28 + $0xd0] sm:$0xff] %v1726_v15 }
 0x2d0   : > { %v1502_v10 = vpop.f32.mrf.mxu2  ;;  %v1728_v16 = vpop.f32.mrf.mxu0 }
 0x2d1   : > { %v1837_v46 = vadd.f32 %v1836_v22, %v1806_v3  ;;  %v1503_v60 = vadd.f32 %v1502_v10, %v1390_v54 }
 0x2d2   : > { %v1392_v57 = vpop.f32.mrf.mxu1  ;;  %v1615_v49 = vpop.f32.mrf.mxu3 }
 0x2d3   : > { %v1616_v11 = vadd.f32 %v1615_v49, %v1503_v60  ;;  %v1393_v25 = vadd.f32 %v1392_v57, %v3542_v41 }
 0x2d5   : > { %v1729_v2 = vadd.f32 %v1728_v16, %v1616_v11 }
 0x2d7   : > { %v1769_v0 = vadd.f32 %v1768_v61, %v1729_v2  ;;  %v1807_v23 = vmul.f32 %v1729_v2, %v1729_v2  ;;  %1879 = vst [vmem:[%s3577_s28 + $0xd8] sm:$0xff] %v1729_v2 }
 0x2d8   : > { %v1505_v12 = vpop.f32.mrf.mxu2  ;;  %v1731_v43 = vpop.f32.mrf.mxu0 }
 0x2d9   : > { %v1838_v7 = vadd.f32 %v1837_v46, %v1807_v23  ;;  %v1506_v26 = vadd.f32 %v1505_v12, %v1393_v25 }
 0x2da   : > { %v1395_v20 = vpop.f32.mrf.mxu1  ;;  %v1618_v48 = vpop.f32.mrf.mxu3 }
 0x2db   : > { %v1619_v9 = vadd.f32 %v1618_v48, %v1506_v26  ;;  %v1396_v19 = vadd.f32 %v1395_v20, %v3549_v5 }
 0x2dd   : > { %v1732_v44 = vadd.f32 %v1731_v43, %v1619_v9 }
 0x2df   : > { %v1770_v56 = vadd.f32 %v1769_v0, %v1732_v44  ;;  %v1808_v8 = vmul.f32 %v1732_v44, %v1732_v44  ;;  %1880 = vst [vmem:[%s3577_s28 + $0xe0] sm:$0xff] %v1732_v44 }
 0x2e0   : > { %v1508_v6 = vpop.f32.mrf.mxu2  ;;  %v1734_v55 = vpop.f32.mrf.mxu0 }
 0x2e1   : > { %v1839_v41 = vadd.f32 %v1838_v7, %v1808_v8  ;;  %v1509_v63 = vadd.f32 %v1508_v6, %v1396_v19 }
 0x2e2   : > { %v1398_v4 = vpop.f32.mrf.mxu1  ;;  %v1621_v51 = vpop.f32.mrf.mxu3 }
 0x2e3   : > { %v1622_v38 = vadd.f32 %v1621_v51, %v1509_v63  ;;  %v1399_v53 = vadd.f32 %v1398_v4, %v3556_v45 }
 0x2e5   : > { %v1735_v59 = vadd.f32 %v1734_v55, %v1622_v38 }
 0x2e7   : > { %v1771_v28 = vadd.f32 %v1770_v56, %v1735_v59  ;;  %v1809_v21 = vmul.f32 %v1735_v59, %v1735_v59  ;;  %1881 = vst [vmem:[%s3577_s28 + $0xe8] sm:$0xff] %v1735_v59 }
 0x2e8   : > { %v1511_v30 = vpop.f32.mrf.mxu2  ;;  %v1737_v5 = vpop.f32.mrf.mxu0 }
 0x2e9   : > { %v1840_v40 = vadd.f32 %v1839_v41, %v1809_v21  ;;  %v1512_v27 = vadd.f32 %v1511_v30, %v1399_v53 }
 0x2ea   : > { %v1624_v47 = vpop.f32.mrf.mxu3  ;;  %v1401_v37 = vpop.f32.mrf.mxu1 }
 0x2eb   : > { %v1625_v50 = vadd.f32 %v1624_v47, %v1512_v27  ;;  %v1402_v45 = vadd.f32 %v1401_v37, %v3563_v24 }
 0x2ed   : > { %v1738_v52 = vadd.f32 %v1737_v5, %v1625_v50 }
 0x2ef   : > { %v1772_v32 = vadd.f32 %v1771_v28, %v1738_v52  ;;  %v1810_v58 = vmul.f32 %v1738_v52, %v1738_v52  ;;  %1882 = vst [vmem:[%s3577_s28 + $0xf0] sm:$0xff] %v1738_v52 }
 0x2f0   : > { %v1514_v14 = vpop.f32.mrf.mxu2  ;;  %v1740_v62 = vpop.f32.mrf.mxu0 }
 0x2f1   : > { %v1841_v35 = vadd.f32 %v1840_v40, %v1810_v58  ;;  %v1515_v13 = vadd.f32 %v1514_v14, %v1402_v45 }
 0x2f2   : > { %v1627_v36 = vpop.f32.mrf.mxu3 }
 0x2f3   : > { %v1628_v42 = vadd.f32 %v1627_v36, %v1515_v13 }
 0x2f5   : > { %v1741_v39 = vadd.f32 %v1740_v62, %v1628_v42 }
 0x2f7   : > { %v1773_v18 = vadd.f32 %v1772_v32, %v1741_v39  ;;  %v1811_v31 = vmul.f32 %v1741_v39, %v1741_v39  ;;  %1883 = vst [vmem:[%s3577_s28 + $0xf8] sm:$0xff] %v1741_v39 }
 0x2f8   : > { %2175 = shalt.err (!%p2172_p3)
}
 0x2f9   : > { %s2244_s25 = smov 128   ;;  %s2245_s27 = smov 8   ;;  %v1774_v24 = vrot.slane %v1773_v18, 4  ;;  %v1842_v29 = vadd.f32 %v1841_v35, %v1811_v31  ;;  %vm1849_vm2 = vcmask 1040384  }
 0x2fa   : > { %2078 = dma.vmem_to_hbm [thread:$0]  (%p2304_p5), %s1903_s5, 4096, %s1905_s6, %s1885_s7, %s2244_s25, %s2244_s25, %s2245_s27  }
 0x2fb   : > { %v1775_v22 = vadd.f32 %v1774_v24, %v1773_v18  ;;  %v1843_v1 = vrot.slane %v1842_v29, 4  ;;  %s2019_s28 = sshll.u32 %s3568_s26, 1  ;;  %s2025_s19 = sshll.u32 %s2287_s16, 1 }
 0x2fc   : > { %s1917_s4 = scalar_lea.hbm %s3771_s3, %s2025_s19  ;;  %s174_s5 = scalar_lea.vmem [#allocation4], %s2019_s28 }
 0x2fd   : > { %v1776_v34 = vrot.slane %v1775_v22, 2  ;;  %v1844_v33 = vadd.f32 %v1843_v1, %v1842_v29  ;;  %s1919_s6 = sshll.u32 %s174_s5, 4  ;;  %s1921_s7 = sshll.u32 %s1917_s4, 4  ;;  %s1920_s6 = int_to_ptr.vmem [resolvable:$true] %s1919_s6  ;;  %s1922_s7 = int_to_ptr.hbm [resolvable:$true] %s1921_s7 }
 0x2fe   : > { %s1890_s16 = scalar_lea.sflag [#allocation5], %s3568_s26  ;;  %s2190_s8 = sshra.s32 %s1922_s7, 4  ;;  %s2191_s8 = int_to_ptr.hbm [resolvable:$true] %s2190_s8 }
 0x2ff   : > { %v1777_v17 = vadd.f32 %v1776_v34, %v1775_v22  ;;  %v1845_v15 = vrot.slane %v1844_v33, 2  ;;  %s2192_s9 = scalar_lea.hbm %s2191_s8, 2  ;;  %s2196_s17 = scalar_lea.hbm %s3771_s3, 4 }
 0x300   : > { %p2193_p4 = scmp.ne.s32.totalorder %s2191_s8, %s2192_s9  ;;  %p2197_p9 = scmp.lt.s32.totalorder %s2191_s8, %s3771_s3 }
 0x301   : > { %v1778_v54 = vrot.slane %v1777_v17, 1  ;;  %v1846_v61 = vadd.f32 %v1845_v15, %v1844_v33  ;;  %p2198_p10 = scmp.lt.s32.totalorder %s2196_s17, %s2192_s9 }
 0x302   : > { %p2194_p7 = pnand %p2193_p4, %p2304_p5 }
 0x303   : > { %v1847_v3 = vrot.slane %v1846_v61, 1  ;;  %v1779_v10 = vadd.f32 %v1778_v54, %v1777_v17  ;;  %p2199_p11 = por %p2198_p10, %p2197_p9 }
 0x304   : > { %p2195_p8 = pneg %p2194_p7 }
 0x305   : > { %v1848_v16 = vadd.f32 %v1847_v3, %v1846_v61 }
 0x306   : > { %p2200_p12 = pnand %p2199_p11, %p2195_p8 }
 0x307   : > { %v1850_v46 = vsel %vm1849_vm2, %v1779_v10, %v1848_v16 }
 0x308   : > { %1851 = vst [vmem:[%s174_s5] sm:$0x3] %v1850_v46 }
 0x309   : > { %2203 = shalt.err (!%p2200_p12)
}
 0x30a   : > { %2079 = dma.vmem_to_hbm [thread:$0]  (%p2304_p5), %s1920_s6, 32, %s1922_s7, %s1890_s16  }
 0x30b PF: > { %p2089_p13 = scmp.ge.s32.totalorder %s2242_s15, 2  ;;  %s1933_s26 = sand.u32 1, %s2230_s12  }
 0x30c   : > { %s1934_s25 = scalar_lea.sflag [#allocation3], %s1933_s26 }
 0x30d   : > { %p2083_p0 = pnand %p2089_p13, %p2308_p6 }
 0x30f   : > { %p2084_p1 = pneg %p2083_p0 }
 0x311   : > { %2221 = dma.done.wait (%p2084_p1), %s1934_s25, 4096  }
 0x312   : > { %2223 = vsyncadd (%p2084_p1), %s1934_s25, 4294963200  ;;  %s1944_s27 = scalar_lea.sflag [#allocation5], %s1933_s26 }
 0x313   : > { %2225 = dma.done.wait (%p2084_p1), %s1944_s27, 32  }
 0x314   : > { %2227 = vsyncadd (%p2084_p1), %s1944_s27, 4294967264  ;;  %p17_p5 = scmp.ge.s32.totalorder %s2291_s18, 4   ;;  %s3912_s12 = smov %s2234_s13 }
 0x315   : > { %s3913_s13 = smov %s2238_s14  ;;  %s3914_s14 = smov %s2302_s21 }
 0x316   : > { %s3915_s15 = smov %s2291_s18  ;;  %19 = sbr.rel (!%p17_p5) target bundleno = 5 (0x5), region = 80 }
 0x31b   :  { %1950 = vsyncpa [#allocation3], 1 }
 0x31c   :  { %1952 = vsyncpa [#allocation3 + $0x1], 1 }
 0x31d   :  { %1953 = vsyncpa [#allocation5], 1 }
 0x31e   :  { %1955 = vsyncpa [#allocation5 + $0x1], 1 }

</bundles_post_ra>
